<compile_context>
chip_gen: v7x
topology: tpu7x:2x2x1
jax: 0.10.0
libtpu: 0.0.40
codegen_flags: <defaults>
</compile_context>

<pallas_src>
import functools

import jax
import jax.numpy as jnp
from jax.experimental import pallas as pl
from jax.experimental.pallas import tpu as pltpu


def _round_up(x, m):
    return (x + m - 1) // m * m


def ffn_kernel(x_ref, w1_ref, b1_ref, w2_ref, pkd_ref, o_ref, *, d_real):
    """One row tile of: LayerNorm(x + ReLU(x@W1 + b1)@W2 + b2) * gamma + beta.

    x_ref:   (TM, Dp)  f32   (Dp = d_model rounded up to 128; padded cols are 0)
    w1_ref:  (Dp, Fp)  bf16
    b1_ref:  (1,  Fp)  f32
    w2_ref:  (Fp, Dp)  bf16
    pkd_ref: (3,  Dp)  f32   rows = [b2, gamma, beta] (0 in padded cols)
    """
    x = x_ref[...].astype(jnp.float32)

    # linear1 + ReLU (dropout3 identity): bf16 operands, f32 accumulation on MXU.
    h = jnp.dot(x.astype(jnp.bfloat16), w1_ref[...],
                preferred_element_type=jnp.float32)
    h = jnp.maximum(h + b1_ref[...], 0.0)

    # linear2 (dropout4 identity): bf16 operands, f32 accumulation on MXU.
    y = jnp.dot(h.astype(jnp.bfloat16), w2_ref[...],
                preferred_element_type=jnp.float32)

    pkd = pkd_ref[...]
    y = y + pkd[0:1, :]                  # + b2

    # Residual add. Padded columns of both x and y are exactly zero.
    r = x + y

    # LayerNorm over the d_real real columns (torch eps=1e-5, biased variance).
    d_pad = r.shape[-1]
    inv_d = 1.0 / d_real
    # Padded columns of r are zero, so the mean needs no mask.
    mean = jnp.sum(r, axis=-1, keepdims=True) * inv_d
    cen = r - mean
    if d_pad != d_real:
        # Padded columns of cen are (-mean), so mask them out of the variance.
        col = jax.lax.broadcasted_iota(jnp.int32, (1, d_pad), 1)
        cen_stat = jnp.where(col < d_real, cen, 0.0)
    else:
        cen_stat = cen
    var = jnp.sum(cen_stat * cen_stat, axis=-1, keepdims=True) * inv_d
    normed = cen * jax.lax.rsqrt(var + 1e-5)
    out = normed * pkd[1:2, :] + pkd[2:3, :]      # gamma, beta (0 in pad cols)

    o_ref[...] = out.astype(o_ref.dtype)


def _pick_row_tile(n):
    # Large tiles amortize per-grid-step overhead; cap at 512 so the
    # (tm, Fp) f32 intermediate stays ~2 MiB; keep >= 2 grid steps when
    # possible so rows shard across both TensorCores on v7x.
    return int(min(512, max(8, _round_up(-(-n // 2), 8))))


def ffn_pallas(tgt, w1, b1, w2, b2, gamma, beta, *, tm=None):
    """tgt: (..., d_model). Weights stored transposed vs torch:
    w1=(d_model, d_ffn), w2=(d_ffn, d_model)."""
    orig_shape = tgt.shape
    d_model = orig_shape[-1]
    d_ffn = w1.shape[1]

    x2d = tgt.reshape(-1, d_model)
    n = x2d.shape[0]

    d_pad = _round_up(d_model, 128)      # lane-dense feature axis
    f_pad = _round_up(d_ffn, 128)
    if tm is None:
        tm = _pick_row_tile(n)
    n_pad = _round_up(n, tm)

    # Zero-pad: extra rows/cols are exactly zero so matmuls and the residual
    # are unaffected; LayerNorm stats are masked in-kernel.
    x_p = jnp.pad(x2d.astype(jnp.float32),
                  ((0, n_pad - n), (0, d_pad - d_model)))
    w1_p = jnp.pad(w1.astype(jnp.bfloat16),
                   ((0, d_pad - d_model), (0, f_pad - d_ffn)))
    w2_p = jnp.pad(w2.astype(jnp.bfloat16),
                   ((0, f_pad - d_ffn), (0, d_pad - d_model)))
    b1_p = jnp.pad(b1.astype(jnp.float32), (0, f_pad - d_ffn)).reshape(1, f_pad)
    pkd = jnp.pad(jnp.stack([b2, gamma, beta]).astype(jnp.float32),
                  ((0, 0), (0, d_pad - d_model)))

    kernel = functools.partial(ffn_kernel, d_real=d_model)
    grid = (n_pad // tm,)

    def _run(single_buffer_weights):
        if single_buffer_weights:
            # Grid-invariant weights never re-DMA (index_map constant); one
            # buffer halves their VMEM footprint (matters on v7x's 64 MiB VMEM).
            w_spec = lambda shape: pl.BlockSpec(shape, lambda i: (0, 0),
                                                pipeline_mode=pl.Buffered(1))
        else:
            w_spec = lambda shape: pl.BlockSpec(shape, lambda i: (0, 0))
        return pl.pallas_call(
            kernel,
            out_shape=jax.ShapeDtypeStruct((n_pad, d_pad), tgt.dtype),
            grid_spec=pltpu.PrefetchScalarGridSpec(
                num_scalar_prefetch=0,
                grid=grid,
                in_specs=[
                    pl.BlockSpec((tm, d_pad), lambda i: (i, 0)),   # x row tile
                    w_spec((d_pad, f_pad)),                        # W1 (bf16)
                    pl.BlockSpec((1, f_pad), lambda i: (0, 0)),    # b1
                    w_spec((f_pad, d_pad)),                        # W2 (bf16)
                    pl.BlockSpec((3, d_pad), lambda i: (0, 0)),    # [b2,gamma,beta]
                ],
                out_specs=pl.BlockSpec((tm, d_pad), lambda i: (i, 0)),
            ),
            compiler_params=pltpu.CompilerParams(
                dimension_semantics=("parallel",),
                vmem_limit_bytes=48 * 1024 * 1024,
            ),
        )(x_p, w1_p, b1_p, w2_p, pkd)

    # TODO(synk): for very large d_model*d_ffn add a d_ffn (K) grid axis with an
    # f32 accumulator instead of keeping both full weight matrices resident.
    try:
        out = _run(single_buffer_weights=hasattr(pl, "Buffered"))
    except Exception:
        out = _run(single_buffer_weights=False)

    return out[:n, :d_model].reshape(orig_shape)


def ffn_reference_f32(tgt, w1, b1, w2, b2, gamma, beta):
    x = tgt.astype(jnp.float32)
    hp = jax.lax.Precision.HIGHEST
    h = jnp.maximum(jnp.dot(x, w1, precision=hp) + b1, 0.0)
    y = jnp.dot(h, w2, precision=hp) + b2
    r = x + y
    mean = jnp.mean(r, axis=-1, keepdims=True)
    var = jnp.mean((r - mean) ** 2, axis=-1, keepdims=True)
    return (r - mean) * jax.lax.rsqrt(var + 1e-5) * gamma + beta


def ffn_reference_bf16(tgt, w1, b1, w2, b2, gamma, beta):
    # Same bf16-operand / f32-accumulate matmul policy as the kernel.
    x = tgt.astype(jnp.float32)
    h = jnp.dot(x.astype(jnp.bfloat16), w1.astype(jnp.bfloat16),
                preferred_element_type=jnp.float32) + b1
    h = jnp.maximum(h, 0.0)
    y = jnp.dot(h.astype(jnp.bfloat16), w2.astype(jnp.bfloat16),
                preferred_element_type=jnp.float32) + b2
    r = x + y
    mean = jnp.mean(r, axis=-1, keepdims=True)
    var = jnp.mean((r - mean) ** 2, axis=-1, keepdims=True)
    return (r - mean) * jax.lax.rsqrt(var + 1e-5) * gamma + beta


if __name__ == "__main__":
    d_model = 32
    d_ffn = 1024          # fixed inside FFN.__init__
    seq, batch = 8, 2     # tgt: (seq, batch, d_model)

    key = jax.random.PRNGKey(0)
    k_x, k_w1, k_b1, k_w2, k_b2 = jax.random.split(key, 5)

    tgt = jax.random.normal(k_x, (seq, batch, d_model), dtype=jnp.float32)

    # Parameter shapes per nn.Linear / nn.LayerNorm; stored transposed vs torch
    # so the kernel computes x @ W directly.
    w1 = jax.random.normal(k_w1, (d_model, d_ffn), dtype=jnp.float32) * 0.05
    b1 = jax.random.normal(k_b1, (d_ffn,), dtype=jnp.float32) * 0.05
    w2 = jax.random.normal(k_w2, (d_ffn, d_model), dtype=jnp.float32) * 0.05
    b2 = jax.random.normal(k_b2, (d_model,), dtype=jnp.float32) * 0.05
    gamma = jnp.ones((d_model,), dtype=jnp.float32)
    beta = jnp.zeros((d_model,), dtype=jnp.float32)

    out = ffn_pallas(tgt, w1, b1, w2, b2, gamma, beta)
    out = jax.block_until_ready(out)
    assert out.shape == tgt.shape

    # Matches the kernel's intended bf16-in / f32-accumulate computation ...
    ref_bf16 = ffn_reference_bf16(tgt, w1, b1, w2, b2, gamma, beta)
    assert jnp.allclose(out, ref_bf16, atol=2e-3, rtol=2e-3), \
        "mismatch vs bf16-path reference"

    # ... and stays close to the full-f32 torch-equivalent math.
    ref_f32 = ffn_reference_f32(tgt, w1, b1, w2, b2, gamma, beta)
    assert jnp.allclose(out, ref_f32, atol=1e-2, rtol=1e-2), \
        "mismatch vs f32 reference"

    print("KERNEL_OK")
</pallas_src>

<mosaic_0001>
module attributes {stable_mosaic.version = 11 : i64} {
  func.func @ffn_kernel(%arg0: i32, %arg1: memref<8x128xf32, #tpu.memory_space<vmem>>, %arg2: memref<128x1024xbf16, #tpu.memory_space<vmem>>, %arg3: memref<1x1024xf32, #tpu.memory_space<vmem>>, %arg4: memref<1024x128xbf16, #tpu.memory_space<vmem>>, %arg5: memref<3x128xf32, #tpu.memory_space<vmem>>, %arg6: memref<8x128xf32, #tpu.memory_space<vmem>>) attributes {dimension_semantics = [#tpu.dimension_semantics<parallel>], iteration_bounds = array<i64: 2>, scalar_prefetch = 0 : i64, scratch_operands = 0 : i64, tpu.core_type = #tpu.core_type<tc>, window_params = [{transform_indices = @transform_0, window_bounds = array<i64: 8, 128>}, {pipeline_mode = #tpu.pipeline_mode<synchronous>, transform_indices = @transform_1, window_bounds = array<i64: 128, 1024>}, {pipeline_mode = #tpu.pipeline_mode<synchronous>, transform_indices = @transform_2, window_bounds = array<i64: 1, 1024>}, {pipeline_mode = #tpu.pipeline_mode<synchronous>, transform_indices = @transform_3, window_bounds = array<i64: 1024, 128>}, {pipeline_mode = #tpu.pipeline_mode<synchronous>, transform_indices = @transform_4, window_bounds = array<i64: 3, 128>}, {transform_indices = @transform_5, window_bounds = array<i64: 8, 128>}]} {
    %c0 = arith.constant 0 : index
    %c0_0 = arith.constant 0 : index
    %0 = vector.load %arg1[%c0, %c0_0] : memref<8x128xf32, #tpu.memory_space<vmem>>, vector<8x128xf32>
    %1 = arith.truncf %0 : vector<8x128xf32> to vector<8x128xbf16>
    %c0_1 = arith.constant 0 : index
    %c0_2 = arith.constant 0 : index
    %2 = vector.load %arg2[%c0_1, %c0_2] : memref<128x1024xbf16, #tpu.memory_space<vmem>>, vector<128x1024xbf16>
    %cst = arith.constant dense<0.000000e+00> : vector<8x1024xf32>
    %3 = tpu.matmul %1, %2, %cst {dimension_numbers = #tpu.dot_dimension_numbers<[1], [0], [0], [1], [0, 0, 1, 1], [], []>} : vector<8x128xbf16>, vector<128x1024xbf16>, vector<8x1024xf32> -> vector<8x1024xf32>
    %c0_3 = arith.constant 0 : index
    %c0_4 = arith.constant 0 : index
    %4 = vector.load %arg3[%c0_3, %c0_4] : memref<1x1024xf32, #tpu.memory_space<vmem>>, vector<1x1024xf32>
    %5 = vector.broadcast %4 : vector<1x1024xf32> to vector<8x1024xf32>
    %6 = arith.addf %3, %5 : vector<8x1024xf32>
    %cst_5 = arith.constant 0.000000e+00 : f32
    %7 = vector.broadcast %cst_5 : f32 to vector<8x1024xf32>
    %8 = arith.maximumf %6, %7 : vector<8x1024xf32>
    %9 = arith.truncf %8 : vector<8x1024xf32> to vector<8x1024xbf16>
    %c0_6 = arith.constant 0 : index
    %c0_7 = arith.constant 0 : index
    %10 = vector.load %arg4[%c0_6, %c0_7] : memref<1024x128xbf16, #tpu.memory_space<vmem>>, vector<1024x128xbf16>
    %cst_8 = arith.constant dense<0.000000e+00> : vector<8x128xf32>
    %11 = tpu.matmul %9, %10, %cst_8 {dimension_numbers = #tpu.dot_dimension_numbers<[1], [0], [0], [1], [0, 0, 1, 1], [], []>} : vector<8x1024xbf16>, vector<1024x128xbf16>, vector<8x128xf32> -> vector<8x128xf32>
    %c0_9 = arith.constant 0 : index
    %c0_10 = arith.constant 0 : index
    %12 = vector.load %arg5[%c0_9, %c0_10] : memref<3x128xf32, #tpu.memory_space<vmem>>, vector<3x128xf32>
    %13 = vector.extract_strided_slice %12 {offsets = [0, 0], sizes = [1, 128], strides = [1, 1]} : vector<3x128xf32> to vector<1x128xf32>
    %14 = vector.broadcast %13 : vector<1x128xf32> to vector<8x128xf32>
    %15 = arith.addf %11, %14 : vector<8x128xf32>
    %16 = arith.addf %0, %15 : vector<8x128xf32>
    %cst_11 = arith.constant dense<0.000000e+00> : vector<8xf32>
    %17 = vector.multi_reduction <add>, %16, %cst_11 [1] : vector<8x128xf32> to vector<8xf32>
    %18 = vector.shape_cast %17 : vector<8xf32> to vector<8x1xf32>
    %cst_12 = arith.constant 3.125000e-02 : f32
    %19 = vector.broadcast %cst_12 : f32 to vector<8x1xf32>
    %20 = arith.mulf %18, %19 : vector<8x1xf32>
    %21 = vector.broadcast %20 : vector<8x1xf32> to vector<8x128xf32>
    %22 = arith.subf %16, %21 : vector<8x128xf32>
    %23 = tpu.iota {dimensions = array<i32: 1>} : vector<1x128xi32>
    %c32_i32 = arith.constant 32 : i32
    %24 = vector.broadcast %c32_i32 : i32 to vector<1x128xi32>
    %25 = arith.cmpi slt, %23, %24 : vector<1x128xi32>
    %cst_13 = arith.constant 0.000000e+00 : f32
    %26 = vector.shape_cast %25 : vector<1x128xi1> to vector<1x128xi1>
    %27 = vector.broadcast %26 : vector<1x128xi1> to vector<8x128xi1>
    %28 = vector.broadcast %cst_13 : f32 to vector<8x128xf32>
    %29 = arith.select %27, %22, %28 : vector<8x128xi1>, vector<8x128xf32>
    %30 = arith.mulf %29, %29 : vector<8x128xf32>
    %cst_14 = arith.constant dense<0.000000e+00> : vector<8xf32>
    %31 = vector.multi_reduction <add>, %30, %cst_14 [1] : vector<8x128xf32> to vector<8xf32>
    %32 = vector.shape_cast %31 : vector<8xf32> to vector<8x1xf32>
    %cst_15 = arith.constant 3.125000e-02 : f32
    %33 = vector.broadcast %cst_15 : f32 to vector<8x1xf32>
    %34 = arith.mulf %32, %33 : vector<8x1xf32>
    %cst_16 = arith.constant 9.99999974E-6 : f32
    %35 = vector.broadcast %cst_16 : f32 to vector<8x1xf32>
    %36 = arith.addf %34, %35 : vector<8x1xf32>
    %37 = math.rsqrt %36 : vector<8x1xf32>
    %38 = vector.broadcast %37 : vector<8x1xf32> to vector<8x128xf32>
    %39 = arith.mulf %22, %38 : vector<8x128xf32>
    %40 = vector.extract_strided_slice %12 {offsets = [1, 0], sizes = [1, 128], strides = [1, 1]} : vector<3x128xf32> to vector<1x128xf32>
    %41 = vector.broadcast %40 : vector<1x128xf32> to vector<8x128xf32>
    %42 = arith.mulf %39, %41 : vector<8x128xf32>
    %43 = vector.extract_strided_slice %12 {offsets = [2, 0], sizes = [1, 128], strides = [1, 1]} : vector<3x128xf32> to vector<1x128xf32>
    %44 = vector.broadcast %43 : vector<1x128xf32> to vector<8x128xf32>
    %45 = arith.addf %42, %44 : vector<8x128xf32>
    %c0_17 = arith.constant 0 : index
    %c0_18 = arith.constant 0 : index
    %46 = vector.load %arg6[%c0_17, %c0_18] : memref<8x128xf32, #tpu.memory_space<vmem>>, vector<8x128xf32>
    tpu.vector_store %arg6[%c0_17, %c0_18], %45 {strides = array<i32>} : memref<8x128xf32, #tpu.memory_space<vmem>>, vector<8x128xf32>,
    return
  }
  func.func @transform_0(%arg0: i32) -> (i32, i32) {
    %c0_i32 = arith.constant 0 : i32
    %c0_i32_0 = arith.constant 0 : i32
    return %arg0, %c0_i32 : i32, i32
  }
  func.func @transform_1(%arg0: i32) -> (i32, i32) {
    %c0_i32 = arith.constant 0 : i32
    %c0_i32_0 = arith.constant 0 : i32
    %c0_i32_1 = arith.constant 0 : i32
    return %c0_i32, %c0_i32_0 : i32, i32
  }
  func.func @transform_2(%arg0: i32) -> (i32, i32) {
    %c0_i32 = arith.constant 0 : i32
    %c0_i32_0 = arith.constant 0 : i32
    %c0_i32_1 = arith.constant 0 : i32
    return %c0_i32, %c0_i32_0 : i32, i32
  }
  func.func @transform_3(%arg0: i32) -> (i32, i32) {
    %c0_i32 = arith.constant 0 : i32
    %c0_i32_0 = arith.constant 0 : i32
    %c0_i32_1 = arith.constant 0 : i32
    return %c0_i32, %c0_i32_0 : i32, i32
  }
  func.func @transform_4(%arg0: i32) -> (i32, i32) {
    %c0_i32 = arith.constant 0 : i32
    %c0_i32_0 = arith.constant 0 : i32
    %c0_i32_1 = arith.constant 0 : i32
    return %c0_i32, %c0_i32_0 : i32, i32
  }
  func.func @transform_5(%arg0: i32) -> (i32, i32) {
    %c0_i32 = arith.constant 0 : i32
    %c0_i32_0 = arith.constant 0 : i32
    return %arg0, %c0_i32 : i32, i32
  }
}

module attributes {stable_mosaic.version = 11 : i64} {
  func.func @ffn_kernel(%arg0: i32, %arg1: memref<8x128xf32, #tpu.memory_space<vmem>>, %arg2: memref<128x1024xbf16, #tpu.memory_space<vmem>>, %arg3: memref<1x1024xf32, #tpu.memory_space<vmem>>, %arg4: memref<1024x128xbf16, #tpu.memory_space<vmem>>, %arg5: memref<3x128xf32, #tpu.memory_space<vmem>>, %arg6: memref<8x128xf32, #tpu.memory_space<vmem>>) attributes {dimension_semantics = [#tpu.dimension_semantics<parallel>], iteration_bounds = array<i64: 2>, scalar_prefetch = 0 : i64, scratch_operands = 0 : i64, tpu.core_type = #tpu.core_type<tc>, window_params = [{transform_indices = @transform_0, window_bounds = array<i64: 8, 128>}, {pipeline_mode = #tpu.pipeline_mode<synchronous>, transform_indices = @transform_1, window_bounds = array<i64: 128, 1024>}, {pipeline_mode = #tpu.pipeline_mode<synchronous>, transform_indices = @transform_2, window_bounds = array<i64: 1, 1024>}, {pipeline_mode = #tpu.pipeline_mode<synchronous>, transform_indices = @transform_3, window_bounds = array<i64: 1024, 128>}, {pipeline_mode = #tpu.pipeline_mode<synchronous>, transform_indices = @transform_4, window_bounds = array<i64: 3, 128>}, {transform_indices = @transform_5, window_bounds = array<i64: 8, 128>}]} {
    %c0 = arith.constant 0 : index
    %c0_0 = arith.constant 0 : index
    %0 = vector.load %arg1[%c0, %c0_0] : memref<8x128xf32, #tpu.memory_space<vmem>>, vector<8x128xf32>
    %1 = arith.truncf %0 : vector<8x128xf32> to vector<8x128xbf16>
    %c0_1 = arith.constant 0 : index
    %c0_2 = arith.constant 0 : index
    %2 = vector.load %arg2[%c0_1, %c0_2] : memref<128x1024xbf16, #tpu.memory_space<vmem>>, vector<128x1024xbf16>
    %cst = arith.constant dense<0.000000e+00> : vector<8x1024xf32>
    %3 = tpu.matmul %1, %2, %cst {dimension_numbers = #tpu.dot_dimension_numbers<[1], [0], [0], [1], [0, 0, 1, 1], [], []>} : vector<8x128xbf16>, vector<128x1024xbf16>, vector<8x1024xf32> -> vector<8x1024xf32>
    %c0_3 = arith.constant 0 : index
    %c0_4 = arith.constant 0 : index
    %4 = vector.load %arg3[%c0_3, %c0_4] : memref<1x1024xf32, #tpu.memory_space<vmem>>, vector<1x1024xf32>
    %5 = vector.broadcast %4 : vector<1x1024xf32> to vector<8x1024xf32>
    %6 = arith.addf %3, %5 : vector<8x1024xf32>
    %cst_5 = arith.constant 0.000000e+00 : f32
    %7 = vector.broadcast %cst_5 : f32 to vector<8x1024xf32>
    %8 = arith.maximumf %6, %7 : vector<8x1024xf32>
    %9 = arith.truncf %8 : vector<8x1024xf32> to vector<8x1024xbf16>
    %c0_6 = arith.constant 0 : index
    %c0_7 = arith.constant 0 : index
    %10 = vector.load %arg4[%c0_6, %c0_7] : memref<1024x128xbf16, #tpu.memory_space<vmem>>, vector<1024x128xbf16>
    %cst_8 = arith.constant dense<0.000000e+00> : vector<8x128xf32>
    %11 = tpu.matmul %9, %10, %cst_8 {dimension_numbers = #tpu.dot_dimension_numbers<[1], [0], [0], [1], [0, 0, 1, 1], [], []>} : vector<8x1024xbf16>, vector<1024x128xbf16>, vector<8x128xf32> -> vector<8x128xf32>
    %c0_9 = arith.constant 0 : index
    %c0_10 = arith.constant 0 : index
    %12 = vector.load %arg5[%c0_9, %c0_10] : memref<3x128xf32, #tpu.memory_space<vmem>>, vector<3x128xf32>
    %13 = vector.extract_strided_slice %12 {offsets = [0, 0], sizes = [1, 128], strides = [1, 1]} : vector<3x128xf32> to vector<1x128xf32>
    %14 = vector.broadcast %13 : vector<1x128xf32> to vector<8x128xf32>
    %15 = arith.addf %11, %14 : vector<8x128xf32>
    %16 = arith.addf %0, %15 : vector<8x128xf32>
    %cst_11 = arith.constant dense<0.000000e+00> : vector<8xf32>
    %17 = vector.multi_reduction <add>, %16, %cst_11 [1] : vector<8x128xf32> to vector<8xf32>
    %18 = vector.shape_cast %17 : vector<8xf32> to vector<8x1xf32>
    %cst_12 = arith.constant 3.125000e-02 : f32
    %19 = vector.broadcast %cst_12 : f32 to vector<8x1xf32>
    %20 = arith.mulf %18, %19 : vector<8x1xf32>
    %21 = vector.broadcast %20 : vector<8x1xf32> to vector<8x128xf32>
    %22 = arith.subf %16, %21 : vector<8x128xf32>
    %23 = tpu.iota {dimensions = array<i32: 1>} : vector<1x128xi32>
    %c32_i32 = arith.constant 32 : i32
    %24 = vector.broadcast %c32_i32 : i32 to vector<1x128xi32>
    %25 = arith.cmpi slt, %23, %24 : vector<1x128xi32>
    %cst_13 = arith.constant 0.000000e+00 : f32
    %26 = vector.shape_cast %25 : vector<1x128xi1> to vector<1x128xi1>
    %27 = vector.broadcast %26 : vector<1x128xi1> to vector<8x128xi1>
    %28 = vector.broadcast %cst_13 : f32 to vector<8x128xf32>
    %29 = arith.select %27, %22, %28 : vector<8x128xi1>, vector<8x128xf32>
    %30 = arith.mulf %29, %29 : vector<8x128xf32>
    %cst_14 = arith.constant dense<0.000000e+00> : vector<8xf32>
    %31 = vector.multi_reduction <add>, %30, %cst_14 [1] : vector<8x128xf32> to vector<8xf32>
    %32 = vector.shape_cast %31 : vector<8xf32> to vector<8x1xf32>
    %cst_15 = arith.constant 3.125000e-02 : f32
    %33 = vector.broadcast %cst_15 : f32 to vector<8x1xf32>
    %34 = arith.mulf %32, %33 : vector<8x1xf32>
    %cst_16 = arith.constant 9.99999974E-6 : f32
    %35 = vector.broadcast %cst_16 : f32 to vector<8x1xf32>
    %36 = arith.addf %34, %35 : vector<8x1xf32>
    %37 = math.rsqrt %36 : vector<8x1xf32>
    %38 = vector.broadcast %37 : vector<8x1xf32> to vector<8x128xf32>
    %39 = arith.mulf %22, %38 : vector<8x128xf32>
    %40 = vector.extract_strided_slice %12 {offsets = [1, 0], sizes = [1, 128], strides = [1, 1]} : vector<3x128xf32> to vector<1x128xf32>
    %41 = vector.broadcast %40 : vector<1x128xf32> to vector<8x128xf32>
    %42 = arith.mulf %39, %41 : vector<8x128xf32>
    %43 = vector.extract_strided_slice %12 {offsets = [2, 0], sizes = [1, 128], strides = [1, 1]} : vector<3x128xf32> to vector<1x128xf32>
    %44 = vector.broadcast %43 : vector<1x128xf32> to vector<8x128xf32>
    %45 = arith.addf %42, %44 : vector<8x128xf32>
    %c0_17 = arith.constant 0 : index
    %c0_18 = arith.constant 0 : index
    %46 = vector.load %arg6[%c0_17, %c0_18] : memref<8x128xf32, #tpu.memory_space<vmem>>, vector<8x128xf32>
    tpu.vector_store %arg6[%c0_17, %c0_18], %45 {strides = array<i32>} : memref<8x128xf32, #tpu.memory_space<vmem>>, vector<8x128xf32>,
    return
  }
  func.func @transform_0(%arg0: i32) -> (i32, i32) {
    %c0_i32 = arith.constant 0 : i32
    %c0_i32_0 = arith.constant 0 : i32
    return %arg0, %c0_i32 : i32, i32
  }
  func.func @transform_1(%arg0: i32) -> (i32, i32) {
    %c0_i32 = arith.constant 0 : i32
    %c0_i32_0 = arith.constant 0 : i32
    %c0_i32_1 = arith.constant 0 : i32
    return %c0_i32, %c0_i32_0 : i32, i32
  }
  func.func @transform_2(%arg0: i32) -> (i32, i32) {
    %c0_i32 = arith.constant 0 : i32
    %c0_i32_0 = arith.constant 0 : i32
    %c0_i32_1 = arith.constant 0 : i32
    return %c0_i32, %c0_i32_0 : i32, i32
  }
  func.func @transform_3(%arg0: i32) -> (i32, i32) {
    %c0_i32 = arith.constant 0 : i32
    %c0_i32_0 = arith.constant 0 : i32
    %c0_i32_1 = arith.constant 0 : i32
    return %c0_i32, %c0_i32_0 : i32, i32
  }
  func.func @transform_4(%arg0: i32) -> (i32, i32) {
    %c0_i32 = arith.constant 0 : i32
    %c0_i32_0 = arith.constant 0 : i32
    %c0_i32_1 = arith.constant 0 : i32
    return %c0_i32, %c0_i32_0 : i32, i32
  }
  func.func @transform_5(%arg0: i32) -> (i32, i32) {
    %c0_i32 = arith.constant 0 : i32
    %c0_i32_0 = arith.constant 0 : i32
    return %arg0, %c0_i32 : i32, i32
  }
}

</mosaic_0001>

<bundles_post_ra>
// kernel: tpu_custom_call.1
= control target key start
LH: loop header
LB: loop body
LE: loop exit
PB: predicated region body
PF: predicated region fallthrough
CT: control target
= control target key end

     0   :  { %10 = vsyncpa [#allocation3], 0  ;;  %s2635_s0 = inlined_call_operand.hbm [shape: f32[16,128], index: 0, kind: input, shape index: {}]   ;;  %s2636_s1 = inlined_call_operand.hbm [shape: bf16[128,1024], index: 1, kind: input, shape index: {}]   ;;  %s2637_s2 = inlined_call_operand.hbm [shape: f32[1,1024], index: 2, kind: input, shape index: {}]   ;;  %s2638_s3 = inlined_call_operand.hbm [shape: bf16[1024,128], index: 3, kind: input, shape index: {}]   ;;  %s2639_s4 = inlined_call_operand.vmem [shape: f32[3,128], index: 4, kind: input, shape index: {}]   ;;  %s2640_s5 = inlined_call_operand.hbm [shape: f32[16,128], index: 5, kind: output, shape index: {}]  }
   0x1   :  { %12 = vsyncpa [#allocation3 + $0x1], 0 }
   0x2   :  { %13 = vsyncpa [#allocation6], 0 }
   0x3   :  { %14 = vsyncpa [#allocation9], 0 }
   0x4   :  { %15 = vsyncpa [#allocation4], 0 }
   0x5   :  { %17 = vsyncpa [#allocation4 + $0x1], 0  ;;  %s2322_s18 = smov 0   ;;  %s2324_s19 = smov 0  }
   0x6   :  { %s2326_s20 = smov 0   ;;  %s2328_s21 = smov 0  }
   0x7 LB: > { %s2343_s22 = sadd.s32 4294967295, %s2280_s21   ;;  %s1710_s23 = sadd.s32 4294967294, %s2280_s21   ;;  %s2280_s21 = sphi %s2328_s21, %s2663_s21   ;;  %s2276_s20 = sphi %s2326_s20, %s2662_s20   ;;  %s2272_s19 = sphi %s2324_s19, %s2661_s19   ;;  %s2268_s18 = sphi %s2322_s18, %s2660_s18  }
   0x8   : > { %p43_p0 = scmp.ne.s32.totalorder %s2272_s19, %s2268_s18  ;;  %p2641_p1 = scmp.eq.s32.totalorder %s2343_s22, 0 }
   0x9   : > { %p157_p3 = scmp.eq.s32.totalorder %s1710_s23, 1  ;;  %p1711_p5 = scmp.ge.s32.totalorder %s2280_s21, 1 }
   0xa   : > { %p2352_p4 = por %p2641_p1, %p43_p0  ;;  %p164_p7 = scmp.lt.s32.totalorder %s2280_s21, 3 }
   0xb   : > { %p2357_p6 = por %p157_p3, %p43_p0  ;;  %s2282_s27 = smov [#allocation5]  }
   0xc   : > { %s2644_s24 = scalar_select %p2352_p4, 1, 0 }
   0xd   : > { %s2645_s25 = scalar_select %p2357_p6, 1, 0 }
   0xe   : > { %p2362_p8 = pnand %p1711_p5, %p164_p7  ;;  %s176_s28 = sshll.u32 %s2282_s27, 4  ;;  %s2366_s28 = int_to_ptr.vmem [resolvable:$true] %s176_s28 }
   0xf   : > { %s2283_s30 = smov [#allocation7]   ;;  %s2284_s7 = smov [#allocation8]  }
  0x10   : > { %s2646_s26 = scalar_select %p2362_p8, 1, 0 }
  0x11   : > { %p1960_p9 = pneg %p2362_p8  ;;  %s190_s6 = sshll.u32 %s2283_s30, 4  ;;  %s2377_s6 = int_to_ptr.vmem [resolvable:$true] %s190_s6 }
  0x12   : > { %s2379_s8 = sshll.u32 %s2284_s7, 4  ;;  %s2092_s11 = scalar_lea.hbm %s2636_s1, 8192  ;;  %s201_s8 = int_to_ptr.vmem [resolvable:$true] %s2379_s8 }
  0x13   : > { %p2373_p11 = pnand %p1960_p9, %p2641_p1  ;;  %p2093_p12 = scmp.ne.s32.totalorder %s2636_s1, %s2092_s11 }
  0x14   : > { %p2099_p5 = scmp.lt.u32.totalorder %s2092_s11, %s2636_s1 }
  0x15   : > { %p2389_p13 = pneg %p2373_p11 }
  0x17   : > { %p2095_p0 = pnand %p2389_p13, %p2093_p12 }
  0x19   : > { %p2096_p3 = pneg %p2095_p0 }
  0x1b   : > { %p2101_p7 = pnand %p2099_p5, %p2096_p3 }
  0x1d   : > { %2104 = shalt.err (!%p2101_p7)
}
  0x1e   : > { %s2105_s17 = scalar_lea.vmem %s2366_s28, 8192  ;;  %p2113_p2 = scmp.lt.s32.totalorder %s2366_s28, %s2366_s28 }
  0x1f   : > { %p2106_p9 = scmp.ne.s32.totalorder %s2366_s28, %s2105_s17  ;;  %p2114_p6 = scmp.lt.s32.totalorder %s2105_s17, %s2105_s17 }
  0x21   : > { %p2108_p10 = pnand %p2106_p9, %p2389_p13  ;;  %p2115_p12 = por %p2114_p6, %p2113_p2 }
  0x23   : > { %p2109_p1 = pneg %p2108_p10 }
  0x25   : > { %p2116_p0 = pnand %p2115_p12, %p2109_p1 }
  0x27   : > { %2119 = shalt.err (!%p2116_p0)
}
  0x28   : > { %s2285_s23 = smov 512   ;;  %s2286_s27 = smov 32  }
  0x29   : > { %1963 = dma.hbm_to_vmem [thread:$0]  (!%p2373_p11), %s2636_s1, 8192, %s2366_s28, [#allocation6], %s2285_s23, %s2285_s23, %s2286_s27  }
  0x2a   : > { %s2120_s11 = scalar_lea.hbm %s2637_s2, 128 }
  0x2b   : > { %p2121_p2 = scmp.ne.s32.totalorder %s2637_s2, %s2120_s11  ;;  %p2127_p10 = scmp.lt.u32.totalorder %s2120_s11, %s2637_s2 }
  0x2d   : > { %p2123_p1 = pnand %p2121_p2, %p2389_p13 }
  0x2f   : > { %p2124_p6 = pneg %p2123_p1 }
  0x31   : > { %p2129_p3 = pnand %p2127_p10, %p2124_p6 }
  0x33   : > { %2132 = shalt.err (!%p2129_p3)
}
  0x34   : > { %s2133_s28 = scalar_lea.vmem %s2377_s6, 128  ;;  %p2141_p12 = scmp.lt.s32.totalorder %s2377_s6, %s2377_s6 }
  0x35   : > { %p2134_p5 = scmp.ne.s32.totalorder %s2377_s6, %s2133_s28  ;;  %p2142_p0 = scmp.lt.s32.totalorder %s2133_s28, %s2133_s28 }
  0x37   : > { %p2136_p7 = pnand %p2134_p5, %p2389_p13  ;;  %p2143_p2 = por %p2142_p0, %p2141_p12 }
  0x39   : > { %p2137_p9 = pneg %p2136_p7 }
  0x3b   : > { %p2144_p1 = pnand %p2143_p2, %p2137_p9 }
  0x3d   : > { %2147 = shalt.err (!%p2144_p1)
}
  0x3e   : > { %1966 = dma.hbm_to_vmem [thread:$0]  (!%p2373_p11), %s2637_s2, 128, %s2377_s6, [#allocation6]  }
  0x3f   : > { %s2148_s7 = scalar_lea.hbm %s2638_s3, 8192 }
  0x40   : > { %p2149_p6 = scmp.ne.s32.totalorder %s2638_s3, %s2148_s7  ;;  %p2155_p5 = scmp.lt.u32.totalorder %s2148_s7, %s2638_s3 }
  0x42   : > { %p2151_p10 = pnand %p2149_p6, %p2389_p13 }
  0x44   : > { %p2152_p3 = pneg %p2151_p10 }
  0x46   : > { %p2157_p7 = pnand %p2155_p5, %p2152_p3 }
  0x48   : > { %2160 = shalt.err (!%p2157_p7)
}
  0x49   : > { %s2161_s13 = scalar_lea.vmem %s201_s8, 8192  ;;  %p2169_p2 = scmp.lt.s32.totalorder %s201_s8, %s201_s8 }
  0x4a   : > { %p2162_p9 = scmp.ne.s32.totalorder %s201_s8, %s2161_s13  ;;  %p2170_p1 = scmp.lt.s32.totalorder %s2161_s13, %s2161_s13 }
  0x4c   : > { %p2164_p12 = pnand %p2162_p9, %p2389_p13  ;;  %p2171_p4 = por %p2170_p1, %p2169_p2 }
  0x4e   : > { %p2165_p0 = pneg %p2164_p12 }
  0x50   : > { %p2172_p8 = pnand %p2171_p4, %p2165_p0 }
  0x52   : > { %2175 = shalt.err (!%p2172_p8)
}
  0x53   : > { %s2287_s6 = smov 64   ;;  %s2288_s14 = smov 4  }
  0x54   : > { %1969 = dma.hbm_to_vmem [thread:$0]  (!%p2373_p11), %s2638_s3, 8192, %s201_s8, [#allocation9], %s2287_s6, %s2287_s6, %s2288_s14  }
  0x55   : > { %s2453_s28 = sadd.s32 1, %s2280_s21   ;;  %s30_s23 = sadd.s32 1, %s2276_s20 }
  0x56   : > { %s27_s17 = ssub.s32 %s2280_s21, %s2453_s28  ;;  %p37_p8 = scmp.ne.s32.totalorder %s2276_s20, %s2272_s19 }
  0x57   : > { %p28_p4 = scmp.eq.s32.totalorder %s27_s17, 0  ;;  %p38_p13 = scmp.eq.s32.totalorder %s2280_s21, 0 }
  0x58   : > { %p1981_p6 = scmp.lt.s32.totalorder %s2280_s21, 2  ;;  %p2649_p3 = scmp.eq.s32.totalorder %s2343_s22, 1 }
  0x59   : > { %s2463_s27 = scalar_select %p28_p4, %s2276_s20, %s30_s23  }
  0x5a   : > { %p39_p10 = por %p38_p13, %p37_p8  ;;  %p2467_p5 = por %p2649_p3, %p37_p8 }
  0x5b   : > { %s217_s29 = sand.u32 1, %s2276_s20   ;;  %s1717_s7 = sshll.u32 %s2280_s21, 7 }
  0x5c   : > { %s1716_s8 = sshll.u32 %s217_s29, 3  ;;  %s2476_s11 = scalar_lea.hbm %s2635_s0, %s1717_s7 }
  0x5d   : > { %s221_s12 = scalar_lea.vmem [#allocation2], %s1716_s8  ;;  %p2478_p11 = pnand %p1981_p6, %p39_p10 }
  0x5e   : > { %s228_s13 = sshll.u32 %s221_s12, 4  ;;  %s218_s14 = scalar_lea.sflag [#allocation3], %s217_s29  ;;  %s2482_s13 = int_to_ptr.vmem [resolvable:$true] %s228_s13 }
  0x5f   : > { %s2176_s15 = scalar_lea.hbm %s2476_s11, 128  ;;  %p2178_p9 = pneg %p2478_p11 }
  0x60   : > { %p2177_p7 = scmp.ne.s32.totalorder %s2476_s11, %s2176_s15  ;;  %s2181_s23 = scalar_lea.hbm %s2635_s0, 256 }
  0x61   : > { %p2182_p2 = scmp.lt.u32.totalorder %s2476_s11, %s2635_s0  ;;  %p2183_p1 = scmp.lt.u32.totalorder %s2181_s23, %s2176_s15 }
  0x62   : > { %p2179_p12 = pnand %p2178_p9, %p2177_p7  ;;  %p2185_p8 = scmp.lt.u32.totalorder %s2176_s15, %s2476_s11 }
  0x63   : > { %p2184_p4 = por %p2183_p1, %p2182_p2 }
  0x64   : > { %p2180_p0 = pneg %p2179_p12 }
  0x65   : > { %p2186_p13 = por %p2185_p8, %p2184_p4 }
  0x67   : > { %p2187_p6 = pnand %p2186_p13, %p2180_p0 }
  0x69   : > { %2190 = shalt.err (!%p2187_p6)
}
  0x6a   : > { %s2191_s29 = scalar_lea.vmem %s2482_s13, 128  ;;  %s2289_s9 = smov [#allocation2]  }
  0x6b   : > { %p2192_p10 = scmp.ne.s32.totalorder %s2482_s13, %s2191_s29  ;;  %s2196_s10 = sshll.u32 %s2289_s9, 4  ;;  %s2197_s10 = int_to_ptr.vmem [resolvable:$false] %s2196_s10 }
  0x6c   : > { %s2198_s12 = scalar_lea.vmem %s2197_s10, 256  ;;  %p2199_p12 = scmp.lt.s32.totalorder %s2482_s13, %s2197_s10 }
  0x6d   : > { %p2194_p3 = pnand %p2192_p10, %p2178_p9  ;;  %p2200_p2 = scmp.lt.s32.totalorder %s2198_s12, %s2191_s29 }
  0x6f   : > { %p2195_p7 = pneg %p2194_p3  ;;  %p2201_p1 = por %p2200_p2, %p2199_p12 }
  0x71   : > { %p2202_p4 = pnand %p2201_p1, %p2195_p7 }
  0x73   : > { %2205 = shalt.err (!%p2202_p4)
}
  0x74   : > { %1973 = dma.hbm_to_vmem [thread:$0]  (!%p2478_p11), %s2476_s11, 128, %s2482_s13, %s218_s14  }
  0x75   : > { %p2652_p0 = scmp.ne.s32.totalorder %s2646_s26, 0 }
  0x76   : > { %s2512_s15 = sand.u32 (!%p2652_p0), 1, %s2272_s19   ;;  %p2653_p9 = scmp.ne.s32.totalorder (!%p2652_p0), %s2644_s24, 0 }
  0x77   : > { %237 = sbr.rel (%p2652_p0) target bundleno = 969 (0x3c9), region = 40  ;;  %s1719_s16 = sshll.u32 (!%p2652_p0), %s2512_s15, 3 }
  0x78   : > { %s240_s17 = scalar_lea.sflag (!%p2652_p0), [#allocation3], %s2512_s15  ;;  %s2518_s23 = scalar_lea.vmem (!%p2652_p0), [#allocation2], %s1719_s16 }
  0x7e   : > { %2251 = dma.done.wait (%p2653_p9), %s240_s17, 128  }
  0x7f   : > { %2253 = vsyncadd (%p2653_p9), %s240_s17, 4294967168  ;;  %p2654_p11 = scmp.eq.s32.totalorder %s2343_s22, 0 }
  0x81   : > { %2255 = dma.done.wait (%p2654_p11), [#allocation6], 8320   ;;  %p2655_p8 = pmov %p2654_p11 }
  0x83   : > { %2257 = vsyncadd (%p2655_p8), [#allocation6], 4294958976  ;;  %p2656_p13 = pmov %p2655_p8 }
  0x84   : > { %p2657_p6 = pmov %p2655_p8 }
  0x85   : > { %2259 = dma.done.wait (%p2656_p13), [#allocation9], 8192  }
  0x86   : > { %2261 = vsyncadd (%p2657_p6), [#allocation9], 4294959104  ;;  %v2290_v0 = vmov 0   ;;  %v285_v1 = vld [vmem:[#allocation5] sm:$0xff]  ;;  %v286_v3 = vld [vmem:[#allocation5 + $0x8] sm:$0xff]  ;;  %s1853_s11 = sshll.u32 %s2343_s22, 7 }
  0x87   : > { %743 = vmatprep.mubr.bf16.mxu0 %v2290_v0  ;;  %784 = vmatprep.mubr.bf16.mxu1 %v2290_v0  ;;  %v289_v2 = vld [vmem:[#allocation5 + $0x20] sm:$0xff]  ;;  %v290_v5 = vld [vmem:[#allocation5 + $0x28] sm:$0xff]  ;;  %v287_v60 = vld [vmem:[#allocation5 + $0x10] sm:$0xff]  ;;  %s281_s13 = scalar_lea.vmem [#allocation10], %s1719_s16  ;;  %s2591_s8 = scalar_lea.hbm %s2640_s5, %s1853_s11 }
  0x88   : > { %v1725_v4 = vcombine.high %v285_v1, %v289_v2  ;;  %v1724_v6 = vcombine.low %v285_v1, %v289_v2  ;;  %v293_v7 = vld [vmem:[#allocation5 + $0x40] sm:$0xff]  ;;  %v1727_v9 = vcombine.high %v286_v3, %v290_v5  ;;  %v1726_v10 = vcombine.low %v286_v3, %v290_v5  ;;  %v294_v12 = vld [vmem:[#allocation5 + $0x48] sm:$0xff]  ;;  %v291_v63 = vld [vmem:[#allocation5 + $0x30] sm:$0xff]  ;;  %s1611_s6 = sshll.u32 %s281_s13, 4  ;;  %s1598_s29 = scalar_lea.sflag [#allocation4], %s2512_s15  ;;  %s2593_s6 = int_to_ptr.vmem [resolvable:$true] %s1611_s6 }
  0x89   : > { %v297_v8 = vld [vmem:[#allocation5 + $0x60] sm:$0xff]  ;;  %v298_v13 = vld [vmem:[#allocation5 + $0x68] sm:$0xff]  ;;  %v2535_v2 = vld [vmem:[%s2518_s23] sm:$0xff]  ;;  %s2206_s9 = scalar_lea.vmem %s2593_s6, 128  ;;  %s2291_s22 = smov [#allocation10]  }
  0x8a   : > { %v1733_v11 = vcombine.high %v293_v7, %v297_v8  ;;  %v301_v14 = vld [vmem:[#allocation5 + $0x80] sm:$0xff]  ;;  %711 = vmatprep.subr.bf16.mxu0 %v1725_v4  ;;  %v1735_v15 = vcombine.high %v294_v12, %v298_v13  ;;  %v302_v17 = vld [vmem:[#allocation5 + $0x88] sm:$0xff]  ;;  %752 = vmatprep.subr.bf16.mxu1 %v1727_v9  ;;  %v1732_v19 = vcombine.low %v293_v7, %v297_v8  ;;  %v288_v3 = vld [vmem:[#allocation5 + $0x18] sm:$0xff]  ;;  %p2207_p10 = scmp.ne.s32.totalorder %s2593_s6, %s2206_s9  ;;  %s2210_s10 = sshll.u32 %s2291_s22, 4  ;;  %s2211_s10 = int_to_ptr.vmem [resolvable:$false] %s2210_s10 }
  0x8b   : > { %v305_v16 = vld [vmem:[#allocation5 + $0xa0] sm:$0xff]  ;;  %v306_v18 = vld [vmem:[#allocation5 + $0xa8] sm:$0xff]  ;;  %712 = vmatpush1.bf16.msra.mxu0 %v1724_v6  ;;  %753 = vmatpush1.bf16.msra.mxu1 %v1726_v10  ;;  %v1734_v20 = vcombine.low %v294_v12, %v298_v13  ;;  %v292_v4 = vld [vmem:[#allocation5 + $0x38] sm:$0xff]  ;;  %v1729_v8 = vcombine.high %v287_v60, %v291_v63  ;;  %v2539_v12 = vpack.c.bf16 %v2535_v2, %v2535_v2  ;;  %s2212_s12 = scalar_lea.vmem %s2211_s10, 256  ;;  %p2213_p12 = scmp.lt.s32.totalorder %s2593_s6, %s2211_s10 }
  0x8c   : > { %713 = vmatprep.subr.bf16.mxu0 %v1733_v11  ;;  %v1741_v21 = vcombine.high %v301_v14, %v305_v16  ;;  %754 = vmatprep.subr.bf16.mxu1 %v1735_v15  ;;  %v1743_v22 = vcombine.high %v302_v17, %v306_v18  ;;  %v309_v23 = vld [vmem:[#allocation5 + $0xc0] sm:$0xff]  ;;  %v310_v25 = vld [vmem:[#allocation5 + $0xc8] sm:$0xff]  ;;  %v1740_v27 = vcombine.low %v301_v14, %v305_v16  ;;  %v295_v6 = vld [vmem:[#allocation5 + $0x50] sm:$0xff]  ;;  %p2208_p3 = pnand %p2207_p10, %p2467_p5  ;;  %p2214_p2 = scmp.lt.s32.totalorder %s2212_s12, %s2206_s9 }
  0x8d   : > { %v313_v24 = vld [vmem:[#allocation5 + $0xe0] sm:$0xff]  ;;  %v314_v26 = vld [vmem:[#allocation5 + $0xe8] sm:$0xff]  ;;  %v1742_v28 = vcombine.low %v302_v17, %v306_v18  ;;  %v299_v9 = vld [vmem:[#allocation5 + $0x70] sm:$0xff]  ;;  %v1731_v10 = vcombine.high %v288_v3, %v292_v4  ;;  %v1728_v14 = vcombine.low %v287_v60, %v291_v63  ;;  %v1730_v16 = vcombine.low %v288_v3, %v292_v4 }
  0x8e   : > { %v1749_v29 = vcombine.high %v309_v23, %v313_v24  ;;  %v1751_v30 = vcombine.high %v310_v25, %v314_v26  ;;  %v317_v31 = vld [vmem:[#allocation5 + $0x100] sm:$0xff]  ;;  %v318_v33 = vld [vmem:[#allocation5 + $0x108] sm:$0xff]  ;;  %v1748_v35 = vcombine.low %v309_v23, %v313_v24  ;;  %v1750_v36 = vcombine.low %v310_v25, %v314_v26  ;;  %v296_v11 = vld [vmem:[#allocation5 + $0x58] sm:$0xff]  ;;  %p2209_p7 = pneg %p2208_p3  ;;  %p2215_p1 = por %p2214_p2, %p2213_p12 }
  0x8f   : > { %714 = vmatpush1.bf16.msra.mxu0 %v1732_v19  ;;  %755 = vmatpush1.bf16.msra.mxu1 %v1734_v20  ;;  %v321_v32 = vld [vmem:[#allocation5 + $0x120] sm:$0xff]  ;;  %v322_v34 = vld [vmem:[#allocation5 + $0x128] sm:$0xff]  ;;  %v300_v13 = vld [vmem:[#allocation5 + $0x78] sm:$0xff]  ;;  %v1737_v17 = vcombine.high %v295_v6, %v299_v9 }
  0x90   : > { %715 = vmatprep.subr.bf16.mxu0 %v1741_v21  ;;  %756 = vmatprep.subr.bf16.mxu1 %v1743_v22  ;;  %v1757_v37 = vcombine.high %v317_v31, %v321_v32  ;;  %v1759_v38 = vcombine.high %v318_v33, %v322_v34  ;;  %v325_v39 = vld [vmem:[#allocation5 + $0x140] sm:$0xff]  ;;  %v326_v41 = vld [vmem:[#allocation5 + $0x148] sm:$0xff]  ;;  %v1756_v43 = vcombine.low %v317_v31, %v321_v32  ;;  %v303_v15 = vld [vmem:[#allocation5 + $0x90] sm:$0xff]  ;;  %p2216_p4 = pnand %p2215_p1, %p2209_p7 }
  0x91   : > { %v329_v40 = vld [vmem:[#allocation5 + $0x160] sm:$0xff]  ;;  %v330_v42 = vld [vmem:[#allocation5 + $0x168] sm:$0xff]  ;;  %v1758_v44 = vcombine.low %v318_v33, %v322_v34  ;;  %v307_v18 = vld [vmem:[#allocation5 + $0xb0] sm:$0xff]  ;;  %v1739_v19 = vcombine.high %v296_v11, %v300_v13  ;;  %v1736_v22 = vcombine.low %v295_v6, %v299_v9  ;;  %v1738_v24 = vcombine.low %v296_v11, %v300_v13 }
  0x92   : > { %v1765_v45 = vcombine.high %v325_v39, %v329_v40  ;;  %v1767_v46 = vcombine.high %v326_v41, %v330_v42  ;;  %v333_v47 = vld [vmem:[#allocation5 + $0x180] sm:$0xff]  ;;  %v334_v49 = vld [vmem:[#allocation5 + $0x188] sm:$0xff]  ;;  %v1764_v51 = vcombine.low %v325_v39, %v329_v40  ;;  %v1766_v52 = vcombine.low %v326_v41, %v330_v42  ;;  %v304_v20 = vld [vmem:[#allocation5 + $0x98] sm:$0xff] }
  0x93   : > { %716 = vmatpush1.bf16.msra.mxu0 %v1740_v27  ;;  %757 = vmatpush1.bf16.msra.mxu1 %v1742_v28  ;;  %v337_v48 = vld [vmem:[#allocation5 + $0x1a0] sm:$0xff]  ;;  %v338_v50 = vld [vmem:[#allocation5 + $0x1a8] sm:$0xff]  ;;  %v308_v21 = vld [vmem:[#allocation5 + $0xb8] sm:$0xff]  ;;  %v1745_v25 = vcombine.high %v303_v15, %v307_v18 }
  0x94   : > { %717 = vmatprep.subr.bf16.mxu0 %v1749_v29  ;;  %758 = vmatprep.subr.bf16.mxu1 %v1751_v30  ;;  %v1773_v53 = vcombine.high %v333_v47, %v337_v48  ;;  %v341_v54 = vld [vmem:[#allocation5 + $0x1c0] sm:$0xff]  ;;  %v1775_v56 = vcombine.high %v334_v49, %v338_v50  ;;  %v342_v57 = vld [vmem:[#allocation5 + $0x1c8] sm:$0xff]  ;;  %v1772_v59 = vcombine.low %v333_v47, %v337_v48  ;;  %v311_v23 = vld [vmem:[#allocation5 + $0xd0] sm:$0xff] }
  0x95   : > { %v345_v55 = vld [vmem:[#allocation5 + $0x1e0] sm:$0xff]  ;;  %v346_v58 = vld [vmem:[#allocation5 + $0x1e8] sm:$0xff]  ;;  %v1774_v61 = vcombine.low %v334_v49, %v338_v50  ;;  %v315_v26 = vld [vmem:[#allocation5 + $0xf0] sm:$0xff]  ;;  %v1747_v27 = vcombine.high %v304_v20, %v308_v21  ;;  %v1744_v30 = vcombine.low %v303_v15, %v307_v18  ;;  %v1746_v32 = vcombine.low %v304_v20, %v308_v21 }
  0x96   : > { %v1781_v62 = vcombine.high %v341_v54, %v345_v55  ;;  %v1783_v1 = vcombine.high %v342_v57, %v346_v58  ;;  %v1780_v5 = vcombine.low %v341_v54, %v345_v55  ;;  %v1782_v7 = vcombine.low %v342_v57, %v346_v58  ;;  %v312_v28 = vld [vmem:[#allocation5 + $0xd8] sm:$0xff]  ;;  %v319_v31 = vld [vmem:[#allocation5 + $0x110] sm:$0xff]  ;;  %v2026_v3 = vld [vmem:[#allocation8 + $0x40] sm:$0xff]  }
  0x97   : > { %718 = vmatpush1.bf16.msra.mxu0 %v1748_v35  ;;  %759 = vmatpush1.bf16.msra.mxu1 %v1750_v36  ;;  %v316_v29 = vld [vmem:[#allocation5 + $0xf8] sm:$0xff]  ;;  %v1753_v33 = vcombine.high %v311_v23, %v315_v26  ;;  %v323_v34 = vld [vmem:[#allocation5 + $0x130] sm:$0xff]  ;;  %v2038_v18 = vld [vmem:[#allocation8 + $0x58] sm:$0xff]  }
  0x98   : > { %719 = vmatprep.subr.bf16.mxu0 %v1757_v37  ;;  %760 = vmatprep.subr.bf16.mxu1 %v1759_v38  ;;  %v1755_v35 = vcombine.high %v312_v28, %v316_v29  ;;  %v320_v36 = vld [vmem:[#allocation5 + $0x118] sm:$0xff]  ;;  %v1752_v38 = vcombine.low %v311_v23, %v315_v26  ;;  %v327_v39 = vld [vmem:[#allocation5 + $0x150] sm:$0xff]  ;;  %v1754_v41 = vcombine.low %v312_v28, %v316_v29  ;;  %v2040_v20 = vld [vmem:[#allocation8 + $0x18] sm:$0xff]  }
  0x99   : > { %v324_v37 = vld [vmem:[#allocation5 + $0x138] sm:$0xff]  ;;  %v331_v40 = vld [vmem:[#allocation5 + $0x170] sm:$0xff]  ;;  %v2041_v21 = vld [vmem:[#allocation8 + $0x98] sm:$0xff]  }
  0x9a   : > { %v328_v42 = vld [vmem:[#allocation5 + $0x158] sm:$0xff]  ;;  %v339_v47 = vld [vmem:[#allocation5 + $0x1b0] sm:$0xff]  ;;  %v1762_v48 = vcombine.low %v320_v36, %v324_v37  ;;  %v1769_v49 = vcombine.high %v327_v39, %v331_v40  ;;  %v2044_v23 = vld [vmem:[#allocation8 + $0x20] sm:$0xff]  }
  0x9b   : > { %720 = vmatpush1.bf16.msra.mxu0 %v1756_v43  ;;  %761 = vmatpush1.bf16.msra.mxu1 %v1758_v44  ;;  %v332_v43 = vld [vmem:[#allocation5 + $0x178] sm:$0xff]  ;;  %v1763_v44 = vcombine.high %v320_v36, %v324_v37  ;;  %v343_v54 = vld [vmem:[#allocation5 + $0x1d0] sm:$0xff]  ;;  %v2057_v36 = vld [vmem:[#allocation8 + $0xb8] sm:$0xff]  }
  0x9c   : > { %721 = vmatprep.subr.bf16.mxu0 %v1765_v45  ;;  %762 = vmatprep.subr.bf16.mxu1 %v1767_v46  ;;  %v1760_v45 = vcombine.low %v319_v31, %v323_v34  ;;  %v335_v46 = vld [vmem:[#allocation5 + $0x190] sm:$0xff]  ;;  %v336_v50 = vld [vmem:[#allocation5 + $0x198] sm:$0xff]  ;;  %v2058_v37 = vld [vmem:[#allocation8 + $0x140] sm:$0xff]  }
  0x9d   : > { %v347_v55 = vld [vmem:[#allocation5 + $0x1f0] sm:$0xff]  ;;  %v1777_v57 = vcombine.high %v335_v46, %v339_v47  ;;  %v344_v58 = vld [vmem:[#allocation5 + $0x1d8] sm:$0xff] }
  0x9e   : > { %v1785_v63 = vcombine.high %v343_v54, %v347_v55  ;;  %v1784_v4 = vcombine.low %v343_v54, %v347_v55  ;;  %v2030_v9 = vld [vmem:[#allocation8 + $0x48] sm:$0xff]   ;;  %v2035_v15 = vld [vmem:[#allocation8 + $0xd0] sm:$0xff]  }
  0x9f   : > { %722 = vmatpush1.bf16.msra.mxu0 %v1764_v51  ;;  %763 = vmatpush1.bf16.msra.mxu1 %v1766_v52  ;;  %v340_v51 = vld [vmem:[#allocation5 + $0x1b8] sm:$0xff]  ;;  %v1771_v52 = vcombine.high %v328_v42, %v332_v43  ;;  %v2032_v11 = vld [vmem:[#allocation8 + $0x8] sm:$0xff]  }
  0xa0   : > { %723 = vmatprep.subr.bf16.mxu0 %v1773_v53  ;;  %764 = vmatprep.subr.bf16.mxu1 %v1775_v56  ;;  %v1768_v53 = vcombine.low %v327_v39, %v331_v40  ;;  %v1770_v56 = vcombine.low %v328_v42, %v332_v43  ;;  %v1779_v60 = vcombine.high %v336_v50, %v340_v51  ;;  %v2033_v13 = vld [vmem:[#allocation8 + $0x88] sm:$0xff]   ;;  %v2050_v29 = vld [vmem:[#allocation8 + $0x70] sm:$0xff]   ;;  %v351_v39 = vlaneseq }
  0xa1   : > { %v2047_v26 = vld [vmem:[#allocation8 + $0xe8] sm:$0xff]  }
  0xa2   : > { %v2049_v28 = vld [vmem:[#allocation8 + $0xa8] sm:$0xff]   ;;  %v2548_v40 = vshrl.u32 %v351_v39, 7 }
  0xa3   : > { %724 = vmatpush1.bf16.msra.mxu0 %v1772_v59  ;;  %765 = vmatpush1.bf16.msra.mxu1 %v1774_v61  ;;  %v348_v59 = vld [vmem:[#allocation5 + $0x1f8] sm:$0xff]  ;;  %v1776_v61 = vcombine.low %v335_v46, %v339_v47 }
  0xa4   : > { %725 = vmatprep.subr.bf16.mxu0 %v1781_v62  ;;  %766 = vmatprep.subr.bf16.mxu1 %v1783_v1  ;;  %v1778_v62 = vcombine.low %v336_v50, %v340_v51  ;;  %v1787_v1 = vcombine.high %v344_v58, %v348_v59  ;;  %v1786_v6 = vcombine.low %v344_v58, %v348_v59  ;;  %v361_v42 = vsub.s32 2, %v2548_v40 }
  0xa5   : > { %v357_v43 = vsub.s32 1, %v2548_v40 }
  0xa7   : > { %726 = vmatpush1.bf16.msra.mxu0 %v1780_v5  ;;  %767 = vmatpush1.bf16.msra.mxu1 %v1782_v7  ;;  %v2027_v5 = vld [vmem:[#allocation8 + $0xc0] sm:$0xff]  }
  0xa8   : > { %793 = vmatprep.subr.bf16.mxu0 %v1729_v8  ;;  %834 = vmatprep.subr.bf16.mxu1 %v1731_v10  ;;  %v2028_v7 = vld [vmem:[#allocation8] sm:$0xff]   ;;  %v2031_v10 = vld [vmem:[#allocation8 + $0xc8] sm:$0xff]  }
  0xa9   : > { %v2029_v8 = vld [vmem:[#allocation8 + $0x80] sm:$0xff]  }
  0xaa   : > { %744 = vmatmul.mubr.bf16.vlgmr.msra.gmra.mrb[0].mxu0 %v2539_v12  ;;  %785 = vmatmul.mubr.bf16.vlgmr.msra.gmra.mrb[0].mxu1 %v2539_v12 }
  0xab   : > { %794 = vmatpush1.bf16.msra.mxu0 %v1728_v14  ;;  %835 = vmatpush1.bf16.msra.mxu1 %v1730_v16  ;;  %v2034_v14 = vld [vmem:[#allocation8 + $0x50] sm:$0xff]  }
  0xac   : > { %795 = vmatprep.subr.bf16.mxu0 %v1737_v17  ;;  %836 = vmatprep.subr.bf16.mxu1 %v1739_v19  ;;  %v2036_v16 = vld [vmem:[#allocation8 + $0x10] sm:$0xff]   ;;  %v2039_v19 = vld [vmem:[#allocation8 + $0xd8] sm:$0xff]  }
  0xad   : > { %825 = vmatprep.mubr.bf16.mxu0 %v2290_v0  ;;  %866 = vmatprep.mubr.bf16.mxu1 %v2290_v0  ;;  %v1761_v0 = vcombine.high %v319_v31, %v323_v34  ;;  %v2037_v17 = vld [vmem:[#allocation8 + $0x90] sm:$0xff]   ;;  %v2055_v34 = vld [vmem:[#allocation8 + $0xf8] sm:$0xff]  }
  0xae   : > { %v2052_v31 = vld [vmem:[#allocation8 + $0x30] sm:$0xff]  }
  0xaf   : > { %796 = vmatpush1.bf16.msra.mxu0 %v1736_v22  ;;  %837 = vmatpush1.bf16.msra.mxu1 %v1738_v24  ;;  %v2042_v22 = vld [vmem:[#allocation8 + $0x60] sm:$0xff]  }
  0xb0   : > { %797 = vmatprep.subr.bf16.mxu0 %v1745_v25  ;;  %838 = vmatprep.subr.bf16.mxu1 %v1747_v27  ;;  %v2045_v24 = vld [vmem:[#allocation8 + $0xa0] sm:$0xff]   ;;  %v2046_v25 = vld [vmem:[#allocation8 + $0x68] sm:$0xff]  }
  0xb1   : > { %v2048_v27 = vld [vmem:[#allocation8 + $0x28] sm:$0xff]  }
  0xb3   : > { %798 = vmatpush1.bf16.msra.mxu0 %v1744_v30  ;;  %839 = vmatpush1.bf16.msra.mxu1 %v1746_v32  ;;  %v2051_v30 = vld [vmem:[#allocation8 + $0xf0] sm:$0xff]  }
  0xb4   : > { %799 = vmatprep.subr.bf16.mxu0 %v1753_v33  ;;  %840 = vmatprep.subr.bf16.mxu1 %v1755_v35  ;;  %v2053_v32 = vld [vmem:[#allocation8 + $0xb0] sm:$0xff]   ;;  %v2054_v33 = vld [vmem:[#allocation8 + $0x78] sm:$0xff]  }
  0xb5   : > { %v2056_v35 = vld [vmem:[#allocation8 + $0x38] sm:$0xff]  }
  0xb7   : > { %800 = vmatpush1.bf16.msra.mxu0 %v1752_v38  ;;  %841 = vmatpush1.bf16.msra.mxu1 %v1754_v41  ;;  %v2059_v38 = vld [vmem:[#allocation8 + $0x1c0] sm:$0xff]   ;;  %v353_v41 = vsub.s32 0, %v2548_v40 }
  0xb8   : > { %801 = vmatprep.subr.bf16.mxu0 %v1761_v0  ;;  %842 = vmatprep.subr.bf16.mxu1 %v1763_v44  ;;  %v2551_v0 = vld [vmem:[#allocation7] sm:$0xff]  ;;  %v365_v44 = vsub.s32 3, %v2548_v40 }
  0xb9   : > { %v362_v46 = vrot.slane %v2551_v0, %v361_v42  ;;  %v358_v47 = vrot.slane %v2551_v0, %v357_v43 }
  0xbb   : > { %802 = vmatpush1.bf16.msra.mxu0 %v1760_v45  ;;  %843 = vmatpush1.bf16.msra.mxu1 %v1762_v48  ;;  %v354_v45 = vrot.slane %v2551_v0, %v353_v41  ;;  %v366_v48 = vrot.slane %v2551_v0, %v365_v44 }
  0xbc   : > { %803 = vmatprep.subr.bf16.mxu0 %v1769_v49  ;;  %844 = vmatprep.subr.bf16.mxu1 %v1771_v52 }
  0xbf   : > { %804 = vmatpush1.bf16.msra.mxu0 %v1768_v53  ;;  %845 = vmatpush1.bf16.msra.mxu1 %v1770_v56 }
  0xc0   : > { %805 = vmatprep.subr.bf16.mxu0 %v1777_v57  ;;  %846 = vmatprep.subr.bf16.mxu1 %v1779_v60 }
  0xc3   : > { %806 = vmatpush1.bf16.msra.mxu0 %v1776_v61  ;;  %847 = vmatpush1.bf16.msra.mxu1 %v1778_v62 }
  0xc4   : > { %807 = vmatprep.subr.bf16.mxu0 %v1785_v63  ;;  %848 = vmatprep.subr.bf16.mxu1 %v1787_v1 }
  0xc7   : > { %808 = vmatpush1.bf16.msra.mxu0 %v1784_v4  ;;  %849 = vmatpush1.bf16.msra.mxu1 %v1786_v6  ;;  %v2060_v6 = vld [vmem:[#allocation8 + $0x100] sm:$0xff]  }
  0xc8   : > { %1856 = vmatprep.subr.bf16.mxu0 %v2026_v3  ;;  %1878 = vmatprep.subr.bf16.mxu1 %v2027_v5 }
  0xca   : > { %826 = vmatmul.mubr.bf16.vlgmr.msra.gmra.mrb[4].mxu0 %v2539_v12  ;;  %867 = vmatmul.mubr.bf16.vlgmr.msra.gmra.mrb[4].mxu1 %v2539_v12  ;;  %v2043_v12 = vld [vmem:[#allocation8 + $0xe0] sm:$0xff]  }
  0xcb   : > { %1857 = vmatpush3.bf16.msra.mxu0 %v2028_v7  ;;  %1879 = vmatpush3.bf16.msra.mxu1 %v2029_v8  ;;  %v2061_v8 = vld [vmem:[#allocation8 + $0x180] sm:$0xff]  }
  0xcc   : > { %1858 = vmatprep.subr.bf16.mxu0 %v2030_v9  ;;  %1880 = vmatprep.subr.bf16.mxu1 %v2031_v10  ;;  %v2062_v9 = vld [vmem:[#allocation8 + $0x148] sm:$0xff]  }
  0xcd   : > { %v2063_v10 = vld [vmem:[#allocation8 + $0x1c8] sm:$0xff]  }
  0xcf   : > { %1859 = vmatpush3.bf16.msra.mxu0 %v2032_v11  ;;  %1881 = vmatpush3.bf16.msra.mxu1 %v2033_v13  ;;  %v2064_v11 = vld [vmem:[#allocation8 + $0x108] sm:$0xff]  }
  0xd0   : > { %1860 = vmatprep.subr.bf16.mxu0 %v2034_v14  ;;  %1882 = vmatprep.subr.bf16.mxu1 %v2035_v15  ;;  %v2065_v13 = vld [vmem:[#allocation8 + $0x188] sm:$0xff]   ;;  %v2066_v14 = vld [vmem:[#allocation8 + $0x150] sm:$0xff]  }
  0xd1   : > { %v2067_v15 = vld [vmem:[#allocation8 + $0x1d0] sm:$0xff]  }
  0xd3   : > { %1861 = vmatpush3.bf16.msra.mxu0 %v2036_v16  ;;  %1883 = vmatpush3.bf16.msra.mxu1 %v2037_v17  ;;  %v2068_v16 = vld [vmem:[#allocation8 + $0x110] sm:$0xff]  }
  0xd4   : > { %1862 = vmatprep.subr.bf16.mxu0 %v2038_v18  ;;  %1884 = vmatprep.subr.bf16.mxu1 %v2039_v19  ;;  %v2069_v17 = vld [vmem:[#allocation8 + $0x190] sm:$0xff]   ;;  %v2070_v18 = vld [vmem:[#allocation8 + $0x158] sm:$0xff]  }
  0xd5   : > { %v2071_v19 = vld [vmem:[#allocation8 + $0x1d8] sm:$0xff]  }
  0xd7   : > { %1863 = vmatpush3.bf16.msra.mxu0 %v2040_v20  ;;  %1885 = vmatpush3.bf16.msra.mxu1 %v2041_v21  ;;  %v2072_v20 = vld [vmem:[#allocation8 + $0x118] sm:$0xff]  }
  0xd8   : > { %1864 = vmatprep.subr.bf16.mxu0 %v2042_v22  ;;  %1886 = vmatprep.subr.bf16.mxu1 %v2043_v12  ;;  %v2073_v21 = vld [vmem:[#allocation8 + $0x198] sm:$0xff]   ;;  %v2074_v22 = vld [vmem:[#allocation8 + $0x160] sm:$0xff]  }
  0xd9   : > { %v2075_v12 = vld [vmem:[#allocation8 + $0x1e0] sm:$0xff]  }
  0xdb   : > { %1865 = vmatpush3.bf16.msra.mxu0 %v2044_v23  ;;  %1887 = vmatpush3.bf16.msra.mxu1 %v2045_v24  ;;  %v2076_v23 = vld [vmem:[#allocation8 + $0x120] sm:$0xff]  }
  0xdc   : > { %1866 = vmatprep.subr.bf16.mxu0 %v2046_v25  ;;  %1888 = vmatprep.subr.bf16.mxu1 %v2047_v26  ;;  %v2077_v24 = vld [vmem:[#allocation8 + $0x1a0] sm:$0xff]   ;;  %v2078_v25 = vld [vmem:[#allocation8 + $0x168] sm:$0xff]  }
  0xdd   : > { %v2079_v26 = vld [vmem:[#allocation8 + $0x1e8] sm:$0xff]  }
  0xdf   : > { %1867 = vmatpush3.bf16.msra.mxu0 %v2048_v27  ;;  %1889 = vmatpush3.bf16.msra.mxu1 %v2049_v28  ;;  %v369_v27 = vsub.s32 4, %v2548_v40  ;;  %v2080_v28 = vld [vmem:[#allocation8 + $0x128] sm:$0xff]  }
  0xe0   : > { %1868 = vmatprep.subr.bf16.mxu0 %v2050_v29  ;;  %1890 = vmatprep.subr.bf16.mxu1 %v2051_v30  ;;  %v377_v29 = vsub.s32 6, %v2548_v40  ;;  %v373_v30 = vsub.s32 5, %v2548_v40 }
  0xe3   : > { %1869 = vmatpush3.bf16.msra.mxu0 %v2052_v31  ;;  %1891 = vmatpush3.bf16.msra.mxu1 %v2053_v32  ;;  %v2081_v31 = vld [vmem:[#allocation8 + $0x1a8] sm:$0xff]   ;;  %v381_v32 = vsub.s32 7, %v2548_v40 }
  0xe4   : > { %1870 = vmatprep.subr.bf16.mxu0 %v2054_v33  ;;  %1892 = vmatprep.subr.bf16.mxu1 %v2055_v34  ;;  %v2082_v33 = vld [vmem:[#allocation8 + $0x170] sm:$0xff]  }
  0xe5   : > { %v2083_v34 = vld [vmem:[#allocation8 + $0x1f0] sm:$0xff]   ;;  %v382_v44 = vrot.slane %v2551_v0, %v381_v32 }
  0xe7   : > { %1871 = vmatpush3.bf16.msra.mxu0 %v2056_v35  ;;  %1893 = vmatpush3.bf16.msra.mxu1 %v2057_v36  ;;  %v370_v35 = vrot.slane %v2551_v0, %v369_v27  ;;  %v378_v36 = vrot.slane %v2551_v0, %v377_v29 }
  0xe8   : > { %1900 = vmatprep.subr.bf16.mxu0 %v2058_v37  ;;  %1922 = vmatprep.subr.bf16.mxu1 %v2059_v38  ;;  %v374_v37 = vrot.slane %v2551_v0, %v373_v30  ;;  %v2084_v38 = vld [vmem:[#allocation8 + $0x130] sm:$0xff]  }
 0x17d   : > { %v745_v49 = vpop.f32.mrb[0].mxu0  ;;  %v786_v51 = vpop.f32.mrb[0].mxu1 }
 0x17e   : > { %v746_v50 = vadd.f32 %v745_v49, %v354_v45  ;;  %v747_v52 = vpop.f32.mrb[1].mxu0  ;;  %v787_v53 = vadd.f32 %v786_v51, %v362_v46  ;;  %v788_v55 = vpop.f32.mrb[1].mxu1  ;;  %v2085_v45 = vld [vmem:[#allocation8 + $0x1b0] sm:$0xff]   ;;  %v2086_v46 = vld [vmem:[#allocation8 + $0x178] sm:$0xff]  }
 0x17f   : > { %v748_v54 = vadd.f32 %v747_v52, %v358_v47  ;;  %v749_v56 = vpop.f32.mrb[2].mxu0  ;;  %v789_v58 = vadd.f32 %v788_v55, %v366_v48  ;;  %v790_v59 = vpop.f32.mrb[2].mxu1  ;;  %v2087_v48 = vld [vmem:[#allocation8 + $0x1f8] sm:$0xff]  }
 0x180   : > { %v875_v57 = vmax.f32 %v746_v50, 0.0  ;;  %v750_v60 = vpop.f32.mrb[3].mxu0  ;;  %v877_v61 = vmax.f32 %v787_v53, 0.0  ;;  %v791_v63 = vpop.f32.mrb[3].mxu1  ;;  %v2088_v56 = vld [vmem:[#allocation8 + $0x138] sm:$0xff]  }
 0x181   : > { %v876_v62 = vmax.f32 %v748_v54, 0.0  ;;  %v878_v3 = vmax.f32 %v789_v58, 0.0  ;;  %v2089_v60 = vld [vmem:[#allocation8 + $0x1b8] sm:$0xff]  }
 0x182   : > { %v883_v1 = vpack.c.bf16 %v875_v57, %v875_v57  ;;  %v885_v4 = vpack.c.bf16 %v877_v61, %v877_v61 }
 0x183   : > { %v884_v5 = vpack.c.bf16 %v876_v62, %v876_v62  ;;  %v886_v7 = vpack.c.bf16 %v878_v3, %v878_v3 }
 0x185   : > { %1440 = vmatprep.mubr.bf16.mxu0 %v884_v5  ;;  %1480 = vmatprep.mubr.bf16.mxu1 %v886_v7  ;;  %v1019_v7 = vld [vmem:[%s2639_s4] sm:$0x7] }
 0x186   : > { %1441 = vmatmul.mubr.bf16.vlgmr.msra.gmra.mrb[8].mxu0 %v883_v1  ;;  %1481 = vmatmul.mubr.bf16.vlgmr.msra.gmra.mrb[8].mxu1 %v885_v4 }
 0x187   : > { %1901 = vmatpush3.bf16.msra.mxu0 %v2060_v6  ;;  %1923 = vmatpush3.bf16.msra.mxu1 %v2061_v8 }
 0x188   : > { %1902 = vmatprep.subr.bf16.mxu0 %v2062_v9  ;;  %1924 = vmatprep.subr.bf16.mxu1 %v2063_v10  ;;  %v1023_v9 = vrot.slane %v1019_v7, %v353_v41 }
 0x18b   : > { %1903 = vmatpush3.bf16.msra.mxu0 %v2064_v11  ;;  %1925 = vmatpush3.bf16.msra.mxu1 %v2065_v13 }
 0x18c   : > { %1904 = vmatprep.subr.bf16.mxu0 %v2066_v14  ;;  %1926 = vmatprep.subr.bf16.mxu1 %v2067_v15 }
 0x18f   : > { %1905 = vmatpush3.bf16.msra.mxu0 %v2068_v16  ;;  %1927 = vmatpush3.bf16.msra.mxu1 %v2069_v17 }
 0x190   : > { %1906 = vmatprep.subr.bf16.mxu0 %v2070_v18  ;;  %1928 = vmatprep.subr.bf16.mxu1 %v2071_v19 }
 0x193   : > { %1907 = vmatpush3.bf16.msra.mxu0 %v2072_v20  ;;  %1929 = vmatpush3.bf16.msra.mxu1 %v2073_v21 }
 0x194   : > { %1908 = vmatprep.subr.bf16.mxu0 %v2074_v22  ;;  %1930 = vmatprep.subr.bf16.mxu1 %v2075_v12 }
 0x197   : > { %1909 = vmatpush3.bf16.msra.mxu0 %v2076_v23  ;;  %1931 = vmatpush3.bf16.msra.mxu1 %v2077_v24 }
 0x198   : > { %1910 = vmatprep.subr.bf16.mxu0 %v2078_v25  ;;  %1932 = vmatprep.subr.bf16.mxu1 %v2079_v26 }
 0x19b   : > { %1911 = vmatpush3.bf16.msra.mxu0 %v2080_v28  ;;  %1933 = vmatpush3.bf16.msra.mxu1 %v2081_v31 }
 0x19c   : > { %1912 = vmatprep.subr.bf16.mxu0 %v2082_v33  ;;  %1934 = vmatprep.subr.bf16.mxu1 %v2083_v34  ;;  %v1574_v33 = vand.u32 127, %v351_v39  ;;  %v1594_v39 = vrot.slane %v1019_v7, %v361_v42 }
 0x19d   : > { %v827_v47 = vpop.f32.mrb[4].mxu0  ;;  %v868_v50 = vpop.f32.mrb[4].mxu1 }
 0x19e   : > { %v828_v49 = vadd.f32 %v827_v47, %v370_v35  ;;  %v829_v51 = vpop.f32.mrb[5].mxu0  ;;  %v869_v52 = vadd.f32 %v868_v50, %v378_v36  ;;  %v870_v54 = vpop.f32.mrb[5].mxu1  ;;  %vm1575_vm0 = vcmp.lt.s32.totalorder %v1574_v33, 32 }
 0x19f   : > { %v830_v53 = vadd.f32 %v829_v51, %v374_v37  ;;  %v831_v55 = vpop.f32.mrb[6].mxu0  ;;  %1913 = vmatpush3.bf16.msra.mxu0 %v2084_v38  ;;  %v871_v58 = vadd.f32 %v870_v54, %v382_v44  ;;  %v872_v59 = vpop.f32.mrb[6].mxu1  ;;  %1935 = vmatpush3.bf16.msra.mxu1 %v2085_v45 }
 0x1a0   : > { %v879_v57 = vmax.f32 %v828_v49, 0.0  ;;  %v832_v0 = vpop.f32.mrb[7].mxu0  ;;  %1914 = vmatprep.subr.bf16.mxu0 %v2086_v46  ;;  %v881_v61 = vmax.f32 %v869_v52, 0.0  ;;  %v873_v63 = vpop.f32.mrb[7].mxu1  ;;  %1936 = vmatprep.subr.bf16.mxu1 %v2087_v48 }
 0x1a1   : > { %v880_v62 = vmax.f32 %v830_v53, 0.0  ;;  %v882_v1 = vmax.f32 %v871_v58, 0.0 }
 0x1a2   : > { %v889_v3 = vpack.c.bf16 %v881_v61, %v881_v61  ;;  %v887_v5 = vpack.c.bf16 %v879_v57, %v879_v57 }
 0x1a3   : > { %v888_v4 = vpack.c.bf16 %v880_v62, %v880_v62  ;;  %1915 = vmatpush3.bf16.msra.mxu0 %v2088_v56  ;;  %v890_v6 = vpack.c.bf16 %v882_v1, %v882_v1  ;;  %1937 = vmatpush3.bf16.msra.mxu1 %v2089_v60 }
 0x1a5   : > { %1520 = vmatprep.mubr.bf16.mxu0 %v888_v4  ;;  %1560 = vmatprep.mubr.bf16.mxu1 %v890_v6 }
 0x1a6   : > { %1521 = vmatmul.mubr.bf16.vlgmr.msra.gmra.mrb[12].mxu0 %v887_v5  ;;  %1561 = vmatmul.mubr.bf16.vlgmr.msra.gmra.mrb[12].mxu1 %v889_v3 }
 0x259   : > { %v1872_v8 = vpop.f32.mrb[8].mxu0  ;;  %v1894_v10 = vpop.f32.mrb[8].mxu1 }
 0x25a   : > { %v1873_v11 = vpop.f32.mrb[9].mxu0  ;;  %v1895_v14 = vpop.f32.mrb[9].mxu1 }
 0x25b   : > { %v1874_v13 = vadd.f32 %v1873_v11, %v1872_v8  ;;  %v1875_v15 = vpop.f32.mrb[10].mxu0  ;;  %v1896_v16 = vadd.f32 %v1895_v14, %v1894_v10  ;;  %v1897_v17 = vpop.f32.mrb[10].mxu1 }
 0x25c   : > { %v1876_v18 = vpop.f32.mrb[11].mxu0  ;;  %v1898_v20 = vpop.f32.mrb[11].mxu1 }
 0x25d   : > { %v1443_v19 = vadd.f32 %v1874_v13, %v1023_v9 }
 0x25f   : > { %v1483_v21 = vadd.f32 %v1896_v16, %v1443_v19 }
 0x279   : > { %v1916_v22 = vpop.f32.mrb[12].mxu0  ;;  %v1938_v12 = vpop.f32.mrb[12].mxu1 }
 0x27a   : > { %v1917_v23 = vpop.f32.mrb[13].mxu0  ;;  %v1939_v25 = vpop.f32.mrb[13].mxu1 }
 0x27b   : > { %v1918_v24 = vadd.f32 %v1917_v23, %v1916_v22  ;;  %v1919_v26 = vpop.f32.mrb[14].mxu0  ;;  %v1940_v27 = vadd.f32 %v1939_v25, %v1938_v12  ;;  %v1941_v28 = vpop.f32.mrb[14].mxu1 }
 0x27c   : > { %v1920_v41 = vpop.f32.mrb[15].mxu0  ;;  %v1942_v30 = vpop.f32.mrb[15].mxu1 }
 0x27d   : > { %v1523_v29 = vadd.f32 %v1918_v24, %v1483_v21 }
 0x27f   : > { %v1563_v31 = vadd.f32 %v1940_v27, %v1523_v29 }
 0x281   : > { %v1568_v32 = vadd.f32 %v1563_v31, %v2535_v2  ;;  %v1589_v2 = vrot.slane %v1019_v7, %v357_v43 }
 0x283   : > { %1569 = vadd.xlane.f32.xlu0 %v1568_v32 }
 0x310   : > { %v1570_v34 = vpop.xlane.xlu0 %1569 }
 0x311   : > { %v1571_v35 = vmul.f32 0.03125, %v1570_v34 }
 0x313   : > { %v1572_v36 = vsub.f32 %v1568_v32, %v1571_v35 }
 0x315   : > { %v1578_v37 = vsel %vm1575_vm0, %v1572_v36, 0.0 }
 0x316   : > { %v1579_v38 = vmul.f32 %v1578_v37, %v1578_v37 }
 0x318   : > { %1580 = vadd.xlane.f32.xlu0 %v1579_v38 }
 0x3a5   : > { %v1581_v44 = vpop.xlane.xlu0 %1580 }
 0x3a6   : > { %v1582_v45 = vmul.f32 0.03125, %v1581_v44 }
 0x3a8   : > { %v1583_v46 = vadd.f32 1e-05, %v1582_v45 }
 0x3aa   : > { %2090 = vrsqrt.f32 %v1583_v46 }
 0x3b4   : > { %v2091_v47 = vpop.eup %2090 }
 0x3b5   : > { %v1585_v48 = vmul.f32 %v2091_v47, %v1572_v36 }
 0x3b7   : > { %v1590_v49 = vmul.f32 %v1589_v2, %v1585_v48 }
 0x3b9   : > { %v1595_v50 = vadd.f32 %v1594_v39, %v1590_v49 }
 0x3bb   : > { %1596 = vst [vmem:[%s281_s13] sm:$0xff] %v1595_v50 }
 0x3bc   : > { %2219 = shalt.err (!%p2216_p4)
}
 0x3bd   : > { %s2220_s15 = scalar_lea.hbm %s2591_s8, 128  ;;  %s2224_s23 = scalar_lea.hbm %s2640_s5, 256 }
 0x3be   : > { %p2221_p0 = scmp.ne.s32.totalorder %s2591_s8, %s2220_s15  ;;  %p2225_p8 = scmp.lt.u32.totalorder %s2591_s8, %s2640_s5 }
 0x3bf   : > { %p2226_p13 = scmp.lt.u32.totalorder %s2224_s23, %s2220_s15  ;;  %p2228_p10 = scmp.lt.u32.totalorder %s2220_s15, %s2591_s8 }
 0x3c0   : > { %p2222_p9 = pnand %p2221_p0, %p2467_p5 }
 0x3c1   : > { %p2227_p6 = por %p2226_p13, %p2225_p8 }
 0x3c2   : > { %p2223_p11 = pneg %p2222_p9 }
 0x3c3   : > { %p2229_p3 = por %p2228_p10, %p2227_p6 }
 0x3c5   : > { %p2230_p7 = pnand %p2229_p3, %p2223_p11 }
 0x3c7   : > { %2233 = shalt.err (!%p2230_p7)
}
 0x3c8   : > { %1958 = dma.vmem_to_hbm [thread:$0]  (%p2467_p5), %s2593_s6, 128, %s2591_s8, %s1598_s29  }
 0x3c9 PF: > { %s1623_s11 = sand.u32 1, %s2268_s18   ;;  %p2658_p12 = scmp.ne.s32.totalorder %s2645_s25, 0 }
 0x3ca   : > { %p2659_p2 = scmp.ge.s32.totalorder %s2280_s21, 2  ;;  %s1624_s13 = scalar_lea.sflag [#allocation4], %s1623_s11 }
 0x3cc   : > { %p1975_p1 = pnand %p2659_p2, %p2658_p12 }
 0x3ce   : > { %2263 = dma.done.wait (!%p1975_p1), %s1624_s13, 128  }
 0x3cf   : > { %2265 = vsyncadd (!%p1975_p1), %s1624_s13, 4294967168  ;;  %p20_p4 = scmp.ge.s32.totalorder %s2453_s28, 4   ;;  %s2660_s18 = smov %s2272_s19 }
 0x3d0   : > { %s2661_s19 = smov %s2276_s20  ;;  %s2662_s20 = smov %s2463_s27 }
 0x3d1   : > { %s2663_s21 = smov %s2453_s28  ;;  %22 = sbr.rel (!%p20_p4) target bundleno = 7 (0x7), region = 97 }
 0x3d8   :  { %1629 = vsyncpa [#allocation3], 1 }
 0x3d9   :  { %1631 = vsyncpa [#allocation3 + $0x1], 1 }
 0x3da   :  { %1632 = vsyncpa [#allocation6], 1 }
 0x3db   :  { %1633 = vsyncpa [#allocation9], 1 }
 0x3dc   :  { %1634 = vsyncpa [#allocation4], 1 }
 0x3dd   :  { %1636 = vsyncpa [#allocation4 + $0x1], 1 }

// kernel: tpu_custom_call.1
= control target key start
LH: loop header
LB: loop body
LE: loop exit
PB: predicated region body
PF: predicated region fallthrough
CT: control target
= control target key end

     0   :  { %10 = vsyncpa [#allocation3], 0  ;;  %s2635_s0 = inlined_call_operand.hbm [shape: f32[16,128], index: 0, kind: input, shape index: {}]   ;;  %s2636_s1 = inlined_call_operand.hbm [shape: bf16[128,1024], index: 1, kind: input, shape index: {}]   ;;  %s2637_s2 = inlined_call_operand.hbm [shape: f32[1,1024], index: 2, kind: input, shape index: {}]   ;;  %s2638_s3 = inlined_call_operand.hbm [shape: bf16[1024,128], index: 3, kind: input, shape index: {}]   ;;  %s2639_s4 = inlined_call_operand.vmem [shape: f32[3,128], index: 4, kind: input, shape index: {}]   ;;  %s2640_s5 = inlined_call_operand.hbm [shape: f32[16,128], index: 5, kind: output, shape index: {}]  }
   0x1   :  { %12 = vsyncpa [#allocation3 + $0x1], 0 }
   0x2   :  { %13 = vsyncpa [#allocation6], 0 }
   0x3   :  { %14 = vsyncpa [#allocation9], 0 }
   0x4   :  { %15 = vsyncpa [#allocation4], 0 }
   0x5   :  { %17 = vsyncpa [#allocation4 + $0x1], 0  ;;  %s2322_s18 = smov 0   ;;  %s2324_s19 = smov 0  }
   0x6   :  { %s2326_s20 = smov 0   ;;  %s2328_s21 = smov 0  }
   0x7 LB: > { %s2343_s22 = sadd.s32 4294967295, %s2280_s21   ;;  %s1710_s23 = sadd.s32 4294967294, %s2280_s21   ;;  %s2280_s21 = sphi %s2328_s21, %s2663_s21   ;;  %s2276_s20 = sphi %s2326_s20, %s2662_s20   ;;  %s2272_s19 = sphi %s2324_s19, %s2661_s19   ;;  %s2268_s18 = sphi %s2322_s18, %s2660_s18  }
   0x8   : > { %p43_p0 = scmp.ne.s32.totalorder %s2272_s19, %s2268_s18  ;;  %p2641_p1 = scmp.eq.s32.totalorder %s2343_s22, 0 }
   0x9   : > { %p157_p3 = scmp.eq.s32.totalorder %s1710_s23, 1  ;;  %p1711_p5 = scmp.ge.s32.totalorder %s2280_s21, 1 }
   0xa   : > { %p2352_p4 = por %p2641_p1, %p43_p0  ;;  %p164_p7 = scmp.lt.s32.totalorder %s2280_s21, 3 }
   0xb   : > { %p2357_p6 = por %p157_p3, %p43_p0  ;;  %s2282_s27 = smov [#allocation5]  }
   0xc   : > { %s2644_s24 = scalar_select %p2352_p4, 1, 0 }
   0xd   : > { %s2645_s25 = scalar_select %p2357_p6, 1, 0 }
   0xe   : > { %p2362_p8 = pnand %p1711_p5, %p164_p7  ;;  %s176_s28 = sshll.u32 %s2282_s27, 4  ;;  %s2366_s28 = int_to_ptr.vmem [resolvable:$true] %s176_s28 }
   0xf   : > { %s2283_s30 = smov [#allocation7]   ;;  %s2284_s7 = smov [#allocation8]  }
  0x10   : > { %s2646_s26 = scalar_select %p2362_p8, 1, 0 }
  0x11   : > { %p1960_p9 = pneg %p2362_p8  ;;  %s190_s6 = sshll.u32 %s2283_s30, 4  ;;  %s2377_s6 = int_to_ptr.vmem [resolvable:$true] %s190_s6 }
  0x12   : > { %s2379_s8 = sshll.u32 %s2284_s7, 4  ;;  %s2092_s11 = scalar_lea.hbm %s2636_s1, 8192  ;;  %s201_s8 = int_to_ptr.vmem [resolvable:$true] %s2379_s8 }
  0x13   : > { %p2373_p11 = pnand %p1960_p9, %p2641_p1  ;;  %p2093_p12 = scmp.ne.s32.totalorder %s2636_s1, %s2092_s11 }
  0x14   : > { %p2099_p5 = scmp.lt.u32.totalorder %s2092_s11, %s2636_s1 }
  0x15   : > { %p2389_p13 = pneg %p2373_p11 }
  0x17   : > { %p2095_p0 = pnand %p2389_p13, %p2093_p12 }
  0x19   : > { %p2096_p3 = pneg %p2095_p0 }
  0x1b   : > { %p2101_p7 = pnand %p2099_p5, %p2096_p3 }
  0x1d   : > { %2104 = shalt.err (!%p2101_p7)
}
  0x1e   : > { %s2105_s17 = scalar_lea.vmem %s2366_s28, 8192  ;;  %p2113_p2 = scmp.lt.s32.totalorder %s2366_s28, %s2366_s28 }
  0x1f   : > { %p2106_p9 = scmp.ne.s32.totalorder %s2366_s28, %s2105_s17  ;;  %p2114_p6 = scmp.lt.s32.totalorder %s2105_s17, %s2105_s17 }
  0x21   : > { %p2108_p10 = pnand %p2106_p9, %p2389_p13  ;;  %p2115_p12 = por %p2114_p6, %p2113_p2 }
  0x23   : > { %p2109_p1 = pneg %p2108_p10 }
  0x25   : > { %p2116_p0 = pnand %p2115_p12, %p2109_p1 }
  0x27   : > { %2119 = shalt.err (!%p2116_p0)
}
  0x28   : > { %s2285_s23 = smov 512   ;;  %s2286_s27 = smov 32  }
  0x29   : > { %1963 = dma.hbm_to_vmem [thread:$0]  (!%p2373_p11), %s2636_s1, 8192, %s2366_s28, [#allocation6], %s2285_s23, %s2285_s23, %s2286_s27  }
  0x2a   : > { %s2120_s11 = scalar_lea.hbm %s2637_s2, 128 }
  0x2b   : > { %p2121_p2 = scmp.ne.s32.totalorder %s2637_s2, %s2120_s11  ;;  %p2127_p10 = scmp.lt.u32.totalorder %s2120_s11, %s2637_s2 }
  0x2d   : > { %p2123_p1 = pnand %p2121_p2, %p2389_p13 }
  0x2f   : > { %p2124_p6 = pneg %p2123_p1 }
  0x31   : > { %p2129_p3 = pnand %p2127_p10, %p2124_p6 }
  0x33   : > { %2132 = shalt.err (!%p2129_p3)
}
  0x34   : > { %s2133_s28 = scalar_lea.vmem %s2377_s6, 128  ;;  %p2141_p12 = scmp.lt.s32.totalorder %s2377_s6, %s2377_s6 }
  0x35   : > { %p2134_p5 = scmp.ne.s32.totalorder %s2377_s6, %s2133_s28  ;;  %p2142_p0 = scmp.lt.s32.totalorder %s2133_s28, %s2133_s28 }
  0x37   : > { %p2136_p7 = pnand %p2134_p5, %p2389_p13  ;;  %p2143_p2 = por %p2142_p0, %p2141_p12 }
  0x39   : > { %p2137_p9 = pneg %p2136_p7 }
  0x3b   : > { %p2144_p1 = pnand %p2143_p2, %p2137_p9 }
  0x3d   : > { %2147 = shalt.err (!%p2144_p1)
}
  0x3e   : > { %1966 = dma.hbm_to_vmem [thread:$0]  (!%p2373_p11), %s2637_s2, 128, %s2377_s6, [#allocation6]  }
  0x3f   : > { %s2148_s7 = scalar_lea.hbm %s2638_s3, 8192 }
  0x40   : > { %p2149_p6 = scmp.ne.s32.totalorder %s2638_s3, %s2148_s7  ;;  %p2155_p5 = scmp.lt.u32.totalorder %s2148_s7, %s2638_s3 }
  0x42   : > { %p2151_p10 = pnand %p2149_p6, %p2389_p13 }
  0x44   : > { %p2152_p3 = pneg %p2151_p10 }
  0x46   : > { %p2157_p7 = pnand %p2155_p5, %p2152_p3 }
  0x48   : > { %2160 = shalt.err (!%p2157_p7)
}
  0x49   : > { %s2161_s13 = scalar_lea.vmem %s201_s8, 8192  ;;  %p2169_p2 = scmp.lt.s32.totalorder %s201_s8, %s201_s8 }
  0x4a   : > { %p2162_p9 = scmp.ne.s32.totalorder %s201_s8, %s2161_s13  ;;  %p2170_p1 = scmp.lt.s32.totalorder %s2161_s13, %s2161_s13 }
  0x4c   : > { %p2164_p12 = pnand %p2162_p9, %p2389_p13  ;;  %p2171_p4 = por %p2170_p1, %p2169_p2 }
  0x4e   : > { %p2165_p0 = pneg %p2164_p12 }
  0x50   : > { %p2172_p8 = pnand %p2171_p4, %p2165_p0 }
  0x52   : > { %2175 = shalt.err (!%p2172_p8)
}
  0x53   : > { %s2287_s6 = smov 64   ;;  %s2288_s14 = smov 4  }
  0x54   : > { %1969 = dma.hbm_to_vmem [thread:$0]  (!%p2373_p11), %s2638_s3, 8192, %s201_s8, [#allocation9], %s2287_s6, %s2287_s6, %s2288_s14  }
  0x55   : > { %s2453_s28 = sadd.s32 1, %s2280_s21   ;;  %s30_s23 = sadd.s32 1, %s2276_s20 }
  0x56   : > { %s27_s17 = ssub.s32 %s2280_s21, %s2453_s28  ;;  %p37_p8 = scmp.ne.s32.totalorder %s2276_s20, %s2272_s19 }
  0x57   : > { %p28_p4 = scmp.eq.s32.totalorder %s27_s17, 0  ;;  %p38_p13 = scmp.eq.s32.totalorder %s2280_s21, 0 }
  0x58   : > { %p1981_p6 = scmp.lt.s32.totalorder %s2280_s21, 2  ;;  %p2649_p3 = scmp.eq.s32.totalorder %s2343_s22, 1 }
  0x59   : > { %s2463_s27 = scalar_select %p28_p4, %s2276_s20, %s30_s23  }
  0x5a   : > { %p39_p10 = por %p38_p13, %p37_p8  ;;  %p2467_p5 = por %p2649_p3, %p37_p8 }
  0x5b   : > { %s217_s29 = sand.u32 1, %s2276_s20   ;;  %s1717_s7 = sshll.u32 %s2280_s21, 7 }
  0x5c   : > { %s1716_s8 = sshll.u32 %s217_s29, 3  ;;  %s2476_s11 = scalar_lea.hbm %s2635_s0, %s1717_s7 }
  0x5d   : > { %s221_s12 = scalar_lea.vmem [#allocation2], %s1716_s8  ;;  %p2478_p11 = pnand %p1981_p6, %p39_p10 }
  0x5e   : > { %s228_s13 = sshll.u32 %s221_s12, 4  ;;  %s218_s14 = scalar_lea.sflag [#allocation3], %s217_s29  ;;  %s2482_s13 = int_to_ptr.vmem [resolvable:$true] %s228_s13 }
  0x5f   : > { %s2176_s15 = scalar_lea.hbm %s2476_s11, 128  ;;  %p2178_p9 = pneg %p2478_p11 }
  0x60   : > { %p2177_p7 = scmp.ne.s32.totalorder %s2476_s11, %s2176_s15  ;;  %s2181_s23 = scalar_lea.hbm %s2635_s0, 256 }
  0x61   : > { %p2182_p2 = scmp.lt.u32.totalorder %s2476_s11, %s2635_s0  ;;  %p2183_p1 = scmp.lt.u32.totalorder %s2181_s23, %s2176_s15 }
  0x62   : > { %p2179_p12 = pnand %p2178_p9, %p2177_p7  ;;  %p2185_p8 = scmp.lt.u32.totalorder %s2176_s15, %s2476_s11 }
  0x63   : > { %p2184_p4 = por %p2183_p1, %p2182_p2 }
  0x64   : > { %p2180_p0 = pneg %p2179_p12 }
  0x65   : > { %p2186_p13 = por %p2185_p8, %p2184_p4 }
  0x67   : > { %p2187_p6 = pnand %p2186_p13, %p2180_p0 }
  0x69   : > { %2190 = shalt.err (!%p2187_p6)
}
  0x6a   : > { %s2191_s29 = scalar_lea.vmem %s2482_s13, 128  ;;  %s2289_s9 = smov [#allocation2]  }
  0x6b   : > { %p2192_p10 = scmp.ne.s32.totalorder %s2482_s13, %s2191_s29  ;;  %s2196_s10 = sshll.u32 %s2289_s9, 4  ;;  %s2197_s10 = int_to_ptr.vmem [resolvable:$false] %s2196_s10 }
  0x6c   : > { %s2198_s12 = scalar_lea.vmem %s2197_s10, 256  ;;  %p2199_p12 = scmp.lt.s32.totalorder %s2482_s13, %s2197_s10 }
  0x6d   : > { %p2194_p3 = pnand %p2192_p10, %p2178_p9  ;;  %p2200_p2 = scmp.lt.s32.totalorder %s2198_s12, %s2191_s29 }
  0x6f   : > { %p2195_p7 = pneg %p2194_p3  ;;  %p2201_p1 = por %p2200_p2, %p2199_p12 }
  0x71   : > { %p2202_p4 = pnand %p2201_p1, %p2195_p7 }
  0x73   : > { %2205 = shalt.err (!%p2202_p4)
}
  0x74   : > { %1973 = dma.hbm_to_vmem [thread:$0]  (!%p2478_p11), %s2476_s11, 128, %s2482_s13, %s218_s14  }
  0x75   : > { %p2652_p0 = scmp.ne.s32.totalorder %s2646_s26, 0 }
  0x76   : > { %s2512_s15 = sand.u32 (!%p2652_p0), 1, %s2272_s19   ;;  %p2653_p9 = scmp.ne.s32.totalorder (!%p2652_p0), %s2644_s24, 0 }
  0x77   : > { %237 = sbr.rel (%p2652_p0) target bundleno = 969 (0x3c9), region = 40  ;;  %s1719_s16 = sshll.u32 (!%p2652_p0), %s2512_s15, 3 }
  0x78   : > { %s240_s17 = scalar_lea.sflag (!%p2652_p0), [#allocation3], %s2512_s15  ;;  %s2518_s23 = scalar_lea.vmem (!%p2652_p0), [#allocation2], %s1719_s16 }
  0x7e   : > { %2251 = dma.done.wait (%p2653_p9), %s240_s17, 128  }
  0x7f   : > { %2253 = vsyncadd (%p2653_p9), %s240_s17, 4294967168  ;;  %p2654_p11 = scmp.eq.s32.totalorder %s2343_s22, 0 }
  0x81   : > { %2255 = dma.done.wait (%p2654_p11), [#allocation6], 8320   ;;  %p2655_p8 = pmov %p2654_p11 }
  0x83   : > { %2257 = vsyncadd (%p2655_p8), [#allocation6], 4294958976  ;;  %p2656_p13 = pmov %p2655_p8 }
  0x84   : > { %p2657_p6 = pmov %p2655_p8 }
  0x85   : > { %2259 = dma.done.wait (%p2656_p13), [#allocation9], 8192  }
  0x86   : > { %2261 = vsyncadd (%p2657_p6), [#allocation9], 4294959104  ;;  %v2290_v0 = vmov 0   ;;  %v285_v1 = vld [vmem:[#allocation5] sm:$0xff]  ;;  %v286_v3 = vld [vmem:[#allocation5 + $0x8] sm:$0xff]  ;;  %s1853_s11 = sshll.u32 %s2343_s22, 7 }
  0x87   : > { %743 = vmatprep.mubr.bf16.mxu0 %v2290_v0  ;;  %784 = vmatprep.mubr.bf16.mxu1 %v2290_v0  ;;  %v289_v2 = vld [vmem:[#allocation5 + $0x20] sm:$0xff]  ;;  %v290_v5 = vld [vmem:[#allocation5 + $0x28] sm:$0xff]  ;;  %v287_v60 = vld [vmem:[#allocation5 + $0x10] sm:$0xff]  ;;  %s281_s13 = scalar_lea.vmem [#allocation10], %s1719_s16  ;;  %s2591_s8 = scalar_lea.hbm %s2640_s5, %s1853_s11 }
  0x88   : > { %v1725_v4 = vcombine.high %v285_v1, %v289_v2  ;;  %v1724_v6 = vcombine.low %v285_v1, %v289_v2  ;;  %v293_v7 = vld [vmem:[#allocation5 + $0x40] sm:$0xff]  ;;  %v1727_v9 = vcombine.high %v286_v3, %v290_v5  ;;  %v1726_v10 = vcombine.low %v286_v3, %v290_v5  ;;  %v294_v12 = vld [vmem:[#allocation5 + $0x48] sm:$0xff]  ;;  %v291_v63 = vld [vmem:[#allocation5 + $0x30] sm:$0xff]  ;;  %s1611_s6 = sshll.u32 %s281_s13, 4  ;;  %s1598_s29 = scalar_lea.sflag [#allocation4], %s2512_s15  ;;  %s2593_s6 = int_to_ptr.vmem [resolvable:$true] %s1611_s6 }
  0x89   : > { %v297_v8 = vld [vmem:[#allocation5 + $0x60] sm:$0xff]  ;;  %v298_v13 = vld [vmem:[#allocation5 + $0x68] sm:$0xff]  ;;  %v2535_v2 = vld [vmem:[%s2518_s23] sm:$0xff]  ;;  %s2206_s9 = scalar_lea.vmem %s2593_s6, 128  ;;  %s2291_s22 = smov [#allocation10]  }
  0x8a   : > { %v1733_v11 = vcombine.high %v293_v7, %v297_v8  ;;  %v301_v14 = vld [vmem:[#allocation5 + $0x80] sm:$0xff]  ;;  %711 = vmatprep.subr.bf16.mxu0 %v1725_v4  ;;  %v1735_v15 = vcombine.high %v294_v12, %v298_v13  ;;  %v302_v17 = vld [vmem:[#allocation5 + $0x88] sm:$0xff]  ;;  %752 = vmatprep.subr.bf16.mxu1 %v1727_v9  ;;  %v1732_v19 = vcombine.low %v293_v7, %v297_v8  ;;  %v288_v3 = vld [vmem:[#allocation5 + $0x18] sm:$0xff]  ;;  %p2207_p10 = scmp.ne.s32.totalorder %s2593_s6, %s2206_s9  ;;  %s2210_s10 = sshll.u32 %s2291_s22, 4  ;;  %s2211_s10 = int_to_ptr.vmem [resolvable:$false] %s2210_s10 }
  0x8b   : > { %v305_v16 = vld [vmem:[#allocation5 + $0xa0] sm:$0xff]  ;;  %v306_v18 = vld [vmem:[#allocation5 + $0xa8] sm:$0xff]  ;;  %712 = vmatpush1.bf16.msra.mxu0 %v1724_v6  ;;  %753 = vmatpush1.bf16.msra.mxu1 %v1726_v10  ;;  %v1734_v20 = vcombine.low %v294_v12, %v298_v13  ;;  %v292_v4 = vld [vmem:[#allocation5 + $0x38] sm:$0xff]  ;;  %v1729_v8 = vcombine.high %v287_v60, %v291_v63  ;;  %v2539_v12 = vpack.c.bf16 %v2535_v2, %v2535_v2  ;;  %s2212_s12 = scalar_lea.vmem %s2211_s10, 256  ;;  %p2213_p12 = scmp.lt.s32.totalorder %s2593_s6, %s2211_s10 }
  0x8c   : > { %713 = vmatprep.subr.bf16.mxu0 %v1733_v11  ;;  %v1741_v21 = vcombine.high %v301_v14, %v305_v16  ;;  %754 = vmatprep.subr.bf16.mxu1 %v1735_v15  ;;  %v1743_v22 = vcombine.high %v302_v17, %v306_v18  ;;  %v309_v23 = vld [vmem:[#allocation5 + $0xc0] sm:$0xff]  ;;  %v310_v25 = vld [vmem:[#allocation5 + $0xc8] sm:$0xff]  ;;  %v1740_v27 = vcombine.low %v301_v14, %v305_v16  ;;  %v295_v6 = vld [vmem:[#allocation5 + $0x50] sm:$0xff]  ;;  %p2208_p3 = pnand %p2207_p10, %p2467_p5  ;;  %p2214_p2 = scmp.lt.s32.totalorder %s2212_s12, %s2206_s9 }
  0x8d   : > { %v313_v24 = vld [vmem:[#allocation5 + $0xe0] sm:$0xff]  ;;  %v314_v26 = vld [vmem:[#allocation5 + $0xe8] sm:$0xff]  ;;  %v1742_v28 = vcombine.low %v302_v17, %v306_v18  ;;  %v299_v9 = vld [vmem:[#allocation5 + $0x70] sm:$0xff]  ;;  %v1731_v10 = vcombine.high %v288_v3, %v292_v4  ;;  %v1728_v14 = vcombine.low %v287_v60, %v291_v63  ;;  %v1730_v16 = vcombine.low %v288_v3, %v292_v4 }
  0x8e   : > { %v1749_v29 = vcombine.high %v309_v23, %v313_v24  ;;  %v1751_v30 = vcombine.high %v310_v25, %v314_v26  ;;  %v317_v31 = vld [vmem:[#allocation5 + $0x100] sm:$0xff]  ;;  %v318_v33 = vld [vmem:[#allocation5 + $0x108] sm:$0xff]  ;;  %v1748_v35 = vcombine.low %v309_v23, %v313_v24  ;;  %v1750_v36 = vcombine.low %v310_v25, %v314_v26  ;;  %v296_v11 = vld [vmem:[#allocation5 + $0x58] sm:$0xff]  ;;  %p2209_p7 = pneg %p2208_p3  ;;  %p2215_p1 = por %p2214_p2, %p2213_p12 }
  0x8f   : > { %714 = vmatpush1.bf16.msra.mxu0 %v1732_v19  ;;  %755 = vmatpush1.bf16.msra.mxu1 %v1734_v20  ;;  %v321_v32 = vld [vmem:[#allocation5 + $0x120] sm:$0xff]  ;;  %v322_v34 = vld [vmem:[#allocation5 + $0x128] sm:$0xff]  ;;  %v300_v13 = vld [vmem:[#allocation5 + $0x78] sm:$0xff]  ;;  %v1737_v17 = vcombine.high %v295_v6, %v299_v9 }
  0x90   : > { %715 = vmatprep.subr.bf16.mxu0 %v1741_v21  ;;  %756 = vmatprep.subr.bf16.mxu1 %v1743_v22  ;;  %v1757_v37 = vcombine.high %v317_v31, %v321_v32  ;;  %v1759_v38 = vcombine.high %v318_v33, %v322_v34  ;;  %v325_v39 = vld [vmem:[#allocation5 + $0x140] sm:$0xff]  ;;  %v326_v41 = vld [vmem:[#allocation5 + $0x148] sm:$0xff]  ;;  %v1756_v43 = vcombine.low %v317_v31, %v321_v32  ;;  %v303_v15 = vld [vmem:[#allocation5 + $0x90] sm:$0xff]  ;;  %p2216_p4 = pnand %p2215_p1, %p2209_p7 }
  0x91   : > { %v329_v40 = vld [vmem:[#allocation5 + $0x160] sm:$0xff]  ;;  %v330_v42 = vld [vmem:[#allocation5 + $0x168] sm:$0xff]  ;;  %v1758_v44 = vcombine.low %v318_v33, %v322_v34  ;;  %v307_v18 = vld [vmem:[#allocation5 + $0xb0] sm:$0xff]  ;;  %v1739_v19 = vcombine.high %v296_v11, %v300_v13  ;;  %v1736_v22 = vcombine.low %v295_v6, %v299_v9  ;;  %v1738_v24 = vcombine.low %v296_v11, %v300_v13 }
  0x92   : > { %v1765_v45 = vcombine.high %v325_v39, %v329_v40  ;;  %v1767_v46 = vcombine.high %v326_v41, %v330_v42  ;;  %v333_v47 = vld [vmem:[#allocation5 + $0x180] sm:$0xff]  ;;  %v334_v49 = vld [vmem:[#allocation5 + $0x188] sm:$0xff]  ;;  %v1764_v51 = vcombine.low %v325_v39, %v329_v40  ;;  %v1766_v52 = vcombine.low %v326_v41, %v330_v42  ;;  %v304_v20 = vld [vmem:[#allocation5 + $0x98] sm:$0xff] }
  0x93   : > { %716 = vmatpush1.bf16.msra.mxu0 %v1740_v27  ;;  %757 = vmatpush1.bf16.msra.mxu1 %v1742_v28  ;;  %v337_v48 = vld [vmem:[#allocation5 + $0x1a0] sm:$0xff]  ;;  %v338_v50 = vld [vmem:[#allocation5 + $0x1a8] sm:$0xff]  ;;  %v308_v21 = vld [vmem:[#allocation5 + $0xb8] sm:$0xff]  ;;  %v1745_v25 = vcombine.high %v303_v15, %v307_v18 }
  0x94   : > { %717 = vmatprep.subr.bf16.mxu0 %v1749_v29  ;;  %758 = vmatprep.subr.bf16.mxu1 %v1751_v30  ;;  %v1773_v53 = vcombine.high %v333_v47, %v337_v48  ;;  %v341_v54 = vld [vmem:[#allocation5 + $0x1c0] sm:$0xff]  ;;  %v1775_v56 = vcombine.high %v334_v49, %v338_v50  ;;  %v342_v57 = vld [vmem:[#allocation5 + $0x1c8] sm:$0xff]  ;;  %v1772_v59 = vcombine.low %v333_v47, %v337_v48  ;;  %v311_v23 = vld [vmem:[#allocation5 + $0xd0] sm:$0xff] }
  0x95   : > { %v345_v55 = vld [vmem:[#allocation5 + $0x1e0] sm:$0xff]  ;;  %v346_v58 = vld [vmem:[#allocation5 + $0x1e8] sm:$0xff]  ;;  %v1774_v61 = vcombine.low %v334_v49, %v338_v50  ;;  %v315_v26 = vld [vmem:[#allocation5 + $0xf0] sm:$0xff]  ;;  %v1747_v27 = vcombine.high %v304_v20, %v308_v21  ;;  %v1744_v30 = vcombine.low %v303_v15, %v307_v18  ;;  %v1746_v32 = vcombine.low %v304_v20, %v308_v21 }
  0x96   : > { %v1781_v62 = vcombine.high %v341_v54, %v345_v55  ;;  %v1783_v1 = vcombine.high %v342_v57, %v346_v58  ;;  %v1780_v5 = vcombine.low %v341_v54, %v345_v55  ;;  %v1782_v7 = vcombine.low %v342_v57, %v346_v58  ;;  %v312_v28 = vld [vmem:[#allocation5 + $0xd8] sm:$0xff]  ;;  %v319_v31 = vld [vmem:[#allocation5 + $0x110] sm:$0xff]  ;;  %v2026_v3 = vld [vmem:[#allocation8 + $0x40] sm:$0xff]  }
  0x97   : > { %718 = vmatpush1.bf16.msra.mxu0 %v1748_v35  ;;  %759 = vmatpush1.bf16.msra.mxu1 %v1750_v36  ;;  %v316_v29 = vld [vmem:[#allocation5 + $0xf8] sm:$0xff]  ;;  %v1753_v33 = vcombine.high %v311_v23, %v315_v26  ;;  %v323_v34 = vld [vmem:[#allocation5 + $0x130] sm:$0xff]  ;;  %v2038_v18 = vld [vmem:[#allocation8 + $0x58] sm:$0xff]  }
  0x98   : > { %719 = vmatprep.subr.bf16.mxu0 %v1757_v37  ;;  %760 = vmatprep.subr.bf16.mxu1 %v1759_v38  ;;  %v1755_v35 = vcombine.high %v312_v28, %v316_v29  ;;  %v320_v36 = vld [vmem:[#allocation5 + $0x118] sm:$0xff]  ;;  %v1752_v38 = vcombine.low %v311_v23, %v315_v26  ;;  %v327_v39 = vld [vmem:[#allocation5 + $0x150] sm:$0xff]  ;;  %v1754_v41 = vcombine.low %v312_v28, %v316_v29  ;;  %v2040_v20 = vld [vmem:[#allocation8 + $0x18] sm:$0xff]  }
  0x99   : > { %v324_v37 = vld [vmem:[#allocation5 + $0x138] sm:$0xff]  ;;  %v331_v40 = vld [vmem:[#allocation5 + $0x170] sm:$0xff]  ;;  %v2041_v21 = vld [vmem:[#allocation8 + $0x98] sm:$0xff]  }
  0x9a   : > { %v328_v42 = vld [vmem:[#allocation5 + $0x158] sm:$0xff]  ;;  %v339_v47 = vld [vmem:[#allocation5 + $0x1b0] sm:$0xff]  ;;  %v1762_v48 = vcombine.low %v320_v36, %v324_v37  ;;  %v1769_v49 = vcombine.high %v327_v39, %v331_v40  ;;  %v2044_v23 = vld [vmem:[#allocation8 + $0x20] sm:$0xff]  }
  0x9b   : > { %720 = vmatpush1.bf16.msra.mxu0 %v1756_v43  ;;  %761 = vmatpush1.bf16.msra.mxu1 %v1758_v44  ;;  %v332_v43 = vld [vmem:[#allocation5 + $0x178] sm:$0xff]  ;;  %v1763_v44 = vcombine.high %v320_v36, %v324_v37  ;;  %v343_v54 = vld [vmem:[#allocation5 + $0x1d0] sm:$0xff]  ;;  %v2057_v36 = vld [vmem:[#allocation8 + $0xb8] sm:$0xff]  }
  0x9c   : > { %721 = vmatprep.subr.bf16.mxu0 %v1765_v45  ;;  %762 = vmatprep.subr.bf16.mxu1 %v1767_v46  ;;  %v1760_v45 = vcombine.low %v319_v31, %v323_v34  ;;  %v335_v46 = vld [vmem:[#allocation5 + $0x190] sm:$0xff]  ;;  %v336_v50 = vld [vmem:[#allocation5 + $0x198] sm:$0xff]  ;;  %v2058_v37 = vld [vmem:[#allocation8 + $0x140] sm:$0xff]  }
  0x9d   : > { %v347_v55 = vld [vmem:[#allocation5 + $0x1f0] sm:$0xff]  ;;  %v1777_v57 = vcombine.high %v335_v46, %v339_v47  ;;  %v344_v58 = vld [vmem:[#allocation5 + $0x1d8] sm:$0xff] }
  0x9e   : > { %v1785_v63 = vcombine.high %v343_v54, %v347_v55  ;;  %v1784_v4 = vcombine.low %v343_v54, %v347_v55  ;;  %v2030_v9 = vld [vmem:[#allocation8 + $0x48] sm:$0xff]   ;;  %v2035_v15 = vld [vmem:[#allocation8 + $0xd0] sm:$0xff]  }
  0x9f   : > { %722 = vmatpush1.bf16.msra.mxu0 %v1764_v51  ;;  %763 = vmatpush1.bf16.msra.mxu1 %v1766_v52  ;;  %v340_v51 = vld [vmem:[#allocation5 + $0x1b8] sm:$0xff]  ;;  %v1771_v52 = vcombine.high %v328_v42, %v332_v43  ;;  %v2032_v11 = vld [vmem:[#allocation8 + $0x8] sm:$0xff]  }
  0xa0   : > { %723 = vmatprep.subr.bf16.mxu0 %v1773_v53  ;;  %764 = vmatprep.subr.bf16.mxu1 %v1775_v56  ;;  %v1768_v53 = vcombine.low %v327_v39, %v331_v40  ;;  %v1770_v56 = vcombine.low %v328_v42, %v332_v43  ;;  %v1779_v60 = vcombine.high %v336_v50, %v340_v51  ;;  %v2033_v13 = vld [vmem:[#allocation8 + $0x88] sm:$0xff]   ;;  %v2050_v29 = vld [vmem:[#allocation8 + $0x70] sm:$0xff]   ;;  %v351_v39 = vlaneseq }
  0xa1   : > { %v2047_v26 = vld [vmem:[#allocation8 + $0xe8] sm:$0xff]  }
  0xa2   : > { %v2049_v28 = vld [vmem:[#allocation8 + $0xa8] sm:$0xff]   ;;  %v2548_v40 = vshrl.u32 %v351_v39, 7 }
  0xa3   : > { %724 = vmatpush1.bf16.msra.mxu0 %v1772_v59  ;;  %765 = vmatpush1.bf16.msra.mxu1 %v1774_v61  ;;  %v348_v59 = vld [vmem:[#allocation5 + $0x1f8] sm:$0xff]  ;;  %v1776_v61 = vcombine.low %v335_v46, %v339_v47 }
  0xa4   : > { %725 = vmatprep.subr.bf16.mxu0 %v1781_v62  ;;  %766 = vmatprep.subr.bf16.mxu1 %v1783_v1  ;;  %v1778_v62 = vcombine.low %v336_v50, %v340_v51  ;;  %v1787_v1 = vcombine.high %v344_v58, %v348_v59  ;;  %v1786_v6 = vcombine.low %v344_v58, %v348_v59  ;;  %v361_v42 = vsub.s32 2, %v2548_v40 }
  0xa5   : > { %v357_v43 = vsub.s32 1, %v2548_v40 }
  0xa7   : > { %726 = vmatpush1.bf16.msra.mxu0 %v1780_v5  ;;  %767 = vmatpush1.bf16.msra.mxu1 %v1782_v7  ;;  %v2027_v5 = vld [vmem:[#allocation8 + $0xc0] sm:$0xff]  }
  0xa8   : > { %793 = vmatprep.subr.bf16.mxu0 %v1729_v8  ;;  %834 = vmatprep.subr.bf16.mxu1 %v1731_v10  ;;  %v2028_v7 = vld [vmem:[#allocation8] sm:$0xff]   ;;  %v2031_v10 = vld [vmem:[#allocation8 + $0xc8] sm:$0xff]  }
  0xa9   : > { %v2029_v8 = vld [vmem:[#allocation8 + $0x80] sm:$0xff]  }
  0xaa   : > { %744 = vmatmul.mubr.bf16.vlgmr.msra.gmra.mrb[0].mxu0 %v2539_v12  ;;  %785 = vmatmul.mubr.bf16.vlgmr.msra.gmra.mrb[0].mxu1 %v2539_v12 }
  0xab   : > { %794 = vmatpush1.bf16.msra.mxu0 %v1728_v14  ;;  %835 = vmatpush1.bf16.msra.mxu1 %v1730_v16  ;;  %v2034_v14 = vld [vmem:[#allocation8 + $0x50] sm:$0xff]  }
  0xac   : > { %795 = vmatprep.subr.bf16.mxu0 %v1737_v17  ;;  %836 = vmatprep.subr.bf16.mxu1 %v1739_v19  ;;  %v2036_v16 = vld [vmem:[#allocation8 + $0x10] sm:$0xff]   ;;  %v2039_v19 = vld [vmem:[#allocation8 + $0xd8] sm:$0xff]  }
  0xad   : > { %825 = vmatprep.mubr.bf16.mxu0 %v2290_v0  ;;  %866 = vmatprep.mubr.bf16.mxu1 %v2290_v0  ;;  %v1761_v0 = vcombine.high %v319_v31, %v323_v34  ;;  %v2037_v17 = vld [vmem:[#allocation8 + $0x90] sm:$0xff]   ;;  %v2055_v34 = vld [vmem:[#allocation8 + $0xf8] sm:$0xff]  }
  0xae   : > { %v2052_v31 = vld [vmem:[#allocation8 + $0x30] sm:$0xff]  }
  0xaf   : > { %796 = vmatpush1.bf16.msra.mxu0 %v1736_v22  ;;  %837 = vmatpush1.bf16.msra.mxu1 %v1738_v24  ;;  %v2042_v22 = vld [vmem:[#allocation8 + $0x60] sm:$0xff]  }
  0xb0   : > { %797 = vmatprep.subr.bf16.mxu0 %v1745_v25  ;;  %838 = vmatprep.subr.bf16.mxu1 %v1747_v27  ;;  %v2045_v24 = vld [vmem:[#allocation8 + $0xa0] sm:$0xff]   ;;  %v2046_v25 = vld [vmem:[#allocation8 + $0x68] sm:$0xff]  }
  0xb1   : > { %v2048_v27 = vld [vmem:[#allocation8 + $0x28] sm:$0xff]  }
  0xb3   : > { %798 = vmatpush1.bf16.msra.mxu0 %v1744_v30  ;;  %839 = vmatpush1.bf16.msra.mxu1 %v1746_v32  ;;  %v2051_v30 = vld [vmem:[#allocation8 + $0xf0] sm:$0xff]  }
  0xb4   : > { %799 = vmatprep.subr.bf16.mxu0 %v1753_v33  ;;  %840 = vmatprep.subr.bf16.mxu1 %v1755_v35  ;;  %v2053_v32 = vld [vmem:[#allocation8 + $0xb0] sm:$0xff]   ;;  %v2054_v33 = vld [vmem:[#allocation8 + $0x78] sm:$0xff]  }
  0xb5   : > { %v2056_v35 = vld [vmem:[#allocation8 + $0x38] sm:$0xff]  }
  0xb7   : > { %800 = vmatpush1.bf16.msra.mxu0 %v1752_v38  ;;  %841 = vmatpush1.bf16.msra.mxu1 %v1754_v41  ;;  %v2059_v38 = vld [vmem:[#allocation8 + $0x1c0] sm:$0xff]   ;;  %v353_v41 = vsub.s32 0, %v2548_v40 }
  0xb8   : > { %801 = vmatprep.subr.bf16.mxu0 %v1761_v0  ;;  %842 = vmatprep.subr.bf16.mxu1 %v1763_v44  ;;  %v2551_v0 = vld [vmem:[#allocation7] sm:$0xff]  ;;  %v365_v44 = vsub.s32 3, %v2548_v40 }
  0xb9   : > { %v362_v46 = vrot.slane %v2551_v0, %v361_v42  ;;  %v358_v47 = vrot.slane %v2551_v0, %v357_v43 }
  0xbb   : > { %802 = vmatpush1.bf16.msra.mxu0 %v1760_v45  ;;  %843 = vmatpush1.bf16.msra.mxu1 %v1762_v48  ;;  %v354_v45 = vrot.slane %v2551_v0, %v353_v41  ;;  %v366_v48 = vrot.slane %v2551_v0, %v365_v44 }
  0xbc   : > { %803 = vmatprep.subr.bf16.mxu0 %v1769_v49  ;;  %844 = vmatprep.subr.bf16.mxu1 %v1771_v52 }
  0xbf   : > { %804 = vmatpush1.bf16.msra.mxu0 %v1768_v53  ;;  %845 = vmatpush1.bf16.msra.mxu1 %v1770_v56 }
  0xc0   : > { %805 = vmatprep.subr.bf16.mxu0 %v1777_v57  ;;  %846 = vmatprep.subr.bf16.mxu1 %v1779_v60 }
  0xc3   : > { %806 = vmatpush1.bf16.msra.mxu0 %v1776_v61  ;;  %847 = vmatpush1.bf16.msra.mxu1 %v1778_v62 }
  0xc4   : > { %807 = vmatprep.subr.bf16.mxu0 %v1785_v63  ;;  %848 = vmatprep.subr.bf16.mxu1 %v1787_v1 }
  0xc7   : > { %808 = vmatpush1.bf16.msra.mxu0 %v1784_v4  ;;  %849 = vmatpush1.bf16.msra.mxu1 %v1786_v6  ;;  %v2060_v6 = vld [vmem:[#allocation8 + $0x100] sm:$0xff]  }
  0xc8   : > { %1856 = vmatprep.subr.bf16.mxu0 %v2026_v3  ;;  %1878 = vmatprep.subr.bf16.mxu1 %v2027_v5 }
  0xca   : > { %826 = vmatmul.mubr.bf16.vlgmr.msra.gmra.mrb[4].mxu0 %v2539_v12  ;;  %867 = vmatmul.mubr.bf16.vlgmr.msra.gmra.mrb[4].mxu1 %v2539_v12  ;;  %v2043_v12 = vld [vmem:[#allocation8 + $0xe0] sm:$0xff]  }
  0xcb   : > { %1857 = vmatpush3.bf16.msra.mxu0 %v2028_v7  ;;  %1879 = vmatpush3.bf16.msra.mxu1 %v2029_v8  ;;  %v2061_v8 = vld [vmem:[#allocation8 + $0x180] sm:$0xff]  }
  0xcc   : > { %1858 = vmatprep.subr.bf16.mxu0 %v2030_v9  ;;  %1880 = vmatprep.subr.bf16.mxu1 %v2031_v10  ;;  %v2062_v9 = vld [vmem:[#allocation8 + $0x148] sm:$0xff]  }
  0xcd   : > { %v2063_v10 = vld [vmem:[#allocation8 + $0x1c8] sm:$0xff]  }
  0xcf   : > { %1859 = vmatpush3.bf16.msra.mxu0 %v2032_v11  ;;  %1881 = vmatpush3.bf16.msra.mxu1 %v2033_v13  ;;  %v2064_v11 = vld [vmem:[#allocation8 + $0x108] sm:$0xff]  }
  0xd0   : > { %1860 = vmatprep.subr.bf16.mxu0 %v2034_v14  ;;  %1882 = vmatprep.subr.bf16.mxu1 %v2035_v15  ;;  %v2065_v13 = vld [vmem:[#allocation8 + $0x188] sm:$0xff]   ;;  %v2066_v14 = vld [vmem:[#allocation8 + $0x150] sm:$0xff]  }
  0xd1   : > { %v2067_v15 = vld [vmem:[#allocation8 + $0x1d0] sm:$0xff]  }
  0xd3   : > { %1861 = vmatpush3.bf16.msra.mxu0 %v2036_v16  ;;  %1883 = vmatpush3.bf16.msra.mxu1 %v2037_v17  ;;  %v2068_v16 = vld [vmem:[#allocation8 + $0x110] sm:$0xff]  }
  0xd4   : > { %1862 = vmatprep.subr.bf16.mxu0 %v2038_v18  ;;  %1884 = vmatprep.subr.bf16.mxu1 %v2039_v19  ;;  %v2069_v17 = vld [vmem:[#allocation8 + $0x190] sm:$0xff]   ;;  %v2070_v18 = vld [vmem:[#allocation8 + $0x158] sm:$0xff]  }
  0xd5   : > { %v2071_v19 = vld [vmem:[#allocation8 + $0x1d8] sm:$0xff]  }
  0xd7   : > { %1863 = vmatpush3.bf16.msra.mxu0 %v2040_v20  ;;  %1885 = vmatpush3.bf16.msra.mxu1 %v2041_v21  ;;  %v2072_v20 = vld [vmem:[#allocation8 + $0x118] sm:$0xff]  }
  0xd8   : > { %1864 = vmatprep.subr.bf16.mxu0 %v2042_v22  ;;  %1886 = vmatprep.subr.bf16.mxu1 %v2043_v12  ;;  %v2073_v21 = vld [vmem:[#allocation8 + $0x198] sm:$0xff]   ;;  %v2074_v22 = vld [vmem:[#allocation8 + $0x160] sm:$0xff]  }
  0xd9   : > { %v2075_v12 = vld [vmem:[#allocation8 + $0x1e0] sm:$0xff]  }
  0xdb   : > { %1865 = vmatpush3.bf16.msra.mxu0 %v2044_v23  ;;  %1887 = vmatpush3.bf16.msra.mxu1 %v2045_v24  ;;  %v2076_v23 = vld [vmem:[#allocation8 + $0x120] sm:$0xff]  }
  0xdc   : > { %1866 = vmatprep.subr.bf16.mxu0 %v2046_v25  ;;  %1888 = vmatprep.subr.bf16.mxu1 %v2047_v26  ;;  %v2077_v24 = vld [vmem:[#allocation8 + $0x1a0] sm:$0xff]   ;;  %v2078_v25 = vld [vmem:[#allocation8 + $0x168] sm:$0xff]  }
  0xdd   : > { %v2079_v26 = vld [vmem:[#allocation8 + $0x1e8] sm:$0xff]  }
  0xdf   : > { %1867 = vmatpush3.bf16.msra.mxu0 %v2048_v27  ;;  %1889 = vmatpush3.bf16.msra.mxu1 %v2049_v28  ;;  %v369_v27 = vsub.s32 4, %v2548_v40  ;;  %v2080_v28 = vld [vmem:[#allocation8 + $0x128] sm:$0xff]  }
  0xe0   : > { %1868 = vmatprep.subr.bf16.mxu0 %v2050_v29  ;;  %1890 = vmatprep.subr.bf16.mxu1 %v2051_v30  ;;  %v377_v29 = vsub.s32 6, %v2548_v40  ;;  %v373_v30 = vsub.s32 5, %v2548_v40 }
  0xe3   : > { %1869 = vmatpush3.bf16.msra.mxu0 %v2052_v31  ;;  %1891 = vmatpush3.bf16.msra.mxu1 %v2053_v32  ;;  %v2081_v31 = vld [vmem:[#allocation8 + $0x1a8] sm:$0xff]   ;;  %v381_v32 = vsub.s32 7, %v2548_v40 }
  0xe4   : > { %1870 = vmatprep.subr.bf16.mxu0 %v2054_v33  ;;  %1892 = vmatprep.subr.bf16.mxu1 %v2055_v34  ;;  %v2082_v33 = vld [vmem:[#allocation8 + $0x170] sm:$0xff]  }
  0xe5   : > { %v2083_v34 = vld [vmem:[#allocation8 + $0x1f0] sm:$0xff]   ;;  %v382_v44 = vrot.slane %v2551_v0, %v381_v32 }
  0xe7   : > { %1871 = vmatpush3.bf16.msra.mxu0 %v2056_v35  ;;  %1893 = vmatpush3.bf16.msra.mxu1 %v2057_v36  ;;  %v370_v35 = vrot.slane %v2551_v0, %v369_v27  ;;  %v378_v36 = vrot.slane %v2551_v0, %v377_v29 }
  0xe8   : > { %1900 = vmatprep.subr.bf16.mxu0 %v2058_v37  ;;  %1922 = vmatprep.subr.bf16.mxu1 %v2059_v38  ;;  %v374_v37 = vrot.slane %v2551_v0, %v373_v30  ;;  %v2084_v38 = vld [vmem:[#allocation8 + $0x130] sm:$0xff]  }
 0x17d   : > { %v745_v49 = vpop.f32.mrb[0].mxu0  ;;  %v786_v51 = vpop.f32.mrb[0].mxu1 }
 0x17e   : > { %v746_v50 = vadd.f32 %v745_v49, %v354_v45  ;;  %v747_v52 = vpop.f32.mrb[1].mxu0  ;;  %v787_v53 = vadd.f32 %v786_v51, %v362_v46  ;;  %v788_v55 = vpop.f32.mrb[1].mxu1  ;;  %v2085_v45 = vld [vmem:[#allocation8 + $0x1b0] sm:$0xff]   ;;  %v2086_v46 = vld [vmem:[#allocation8 + $0x178] sm:$0xff]  }
 0x17f   : > { %v748_v54 = vadd.f32 %v747_v52, %v358_v47  ;;  %v749_v56 = vpop.f32.mrb[2].mxu0  ;;  %v789_v58 = vadd.f32 %v788_v55, %v366_v48  ;;  %v790_v59 = vpop.f32.mrb[2].mxu1  ;;  %v2087_v48 = vld [vmem:[#allocation8 + $0x1f8] sm:$0xff]  }
 0x180   : > { %v875_v57 = vmax.f32 %v746_v50, 0.0  ;;  %v750_v60 = vpop.f32.mrb[3].mxu0  ;;  %v877_v61 = vmax.f32 %v787_v53, 0.0  ;;  %v791_v63 = vpop.f32.mrb[3].mxu1  ;;  %v2088_v56 = vld [vmem:[#allocation8 + $0x138] sm:$0xff]  }
 0x181   : > { %v876_v62 = vmax.f32 %v748_v54, 0.0  ;;  %v878_v3 = vmax.f32 %v789_v58, 0.0  ;;  %v2089_v60 = vld [vmem:[#allocation8 + $0x1b8] sm:$0xff]  }
 0x182   : > { %v883_v1 = vpack.c.bf16 %v875_v57, %v875_v57  ;;  %v885_v4 = vpack.c.bf16 %v877_v61, %v877_v61 }
 0x183   : > { %v884_v5 = vpack.c.bf16 %v876_v62, %v876_v62  ;;  %v886_v7 = vpack.c.bf16 %v878_v3, %v878_v3 }
 0x185   : > { %1440 = vmatprep.mubr.bf16.mxu0 %v884_v5  ;;  %1480 = vmatprep.mubr.bf16.mxu1 %v886_v7  ;;  %v1019_v7 = vld [vmem:[%s2639_s4] sm:$0x7] }
 0x186   : > { %1441 = vmatmul.mubr.bf16.vlgmr.msra.gmra.mrb[8].mxu0 %v883_v1  ;;  %1481 = vmatmul.mubr.bf16.vlgmr.msra.gmra.mrb[8].mxu1 %v885_v4 }
 0x187   : > { %1901 = vmatpush3.bf16.msra.mxu0 %v2060_v6  ;;  %1923 = vmatpush3.bf16.msra.mxu1 %v2061_v8 }
 0x188   : > { %1902 = vmatprep.subr.bf16.mxu0 %v2062_v9  ;;  %1924 = vmatprep.subr.bf16.mxu1 %v2063_v10  ;;  %v1023_v9 = vrot.slane %v1019_v7, %v353_v41 }
 0x18b   : > { %1903 = vmatpush3.bf16.msra.mxu0 %v2064_v11  ;;  %1925 = vmatpush3.bf16.msra.mxu1 %v2065_v13 }
 0x18c   : > { %1904 = vmatprep.subr.bf16.mxu0 %v2066_v14  ;;  %1926 = vmatprep.subr.bf16.mxu1 %v2067_v15 }
 0x18f   : > { %1905 = vmatpush3.bf16.msra.mxu0 %v2068_v16  ;;  %1927 = vmatpush3.bf16.msra.mxu1 %v2069_v17 }
 0x190   : > { %1906 = vmatprep.subr.bf16.mxu0 %v2070_v18  ;;  %1928 = vmatprep.subr.bf16.mxu1 %v2071_v19 }
 0x193   : > { %1907 = vmatpush3.bf16.msra.mxu0 %v2072_v20  ;;  %1929 = vmatpush3.bf16.msra.mxu1 %v2073_v21 }
 0x194   : > { %1908 = vmatprep.subr.bf16.mxu0 %v2074_v22  ;;  %1930 = vmatprep.subr.bf16.mxu1 %v2075_v12 }
 0x197   : > { %1909 = vmatpush3.bf16.msra.mxu0 %v2076_v23  ;;  %1931 = vmatpush3.bf16.msra.mxu1 %v2077_v24 }
 0x198   : > { %1910 = vmatprep.subr.bf16.mxu0 %v2078_v25  ;;  %1932 = vmatprep.subr.bf16.mxu1 %v2079_v26 }
 0x19b   : > { %1911 = vmatpush3.bf16.msra.mxu0 %v2080_v28  ;;  %1933 = vmatpush3.bf16.msra.mxu1 %v2081_v31 }
 0x19c   : > { %1912 = vmatprep.subr.bf16.mxu0 %v2082_v33  ;;  %1934 = vmatprep.subr.bf16.mxu1 %v2083_v34  ;;  %v1574_v33 = vand.u32 127, %v351_v39  ;;  %v1594_v39 = vrot.slane %v1019_v7, %v361_v42 }
 0x19d   : > { %v827_v47 = vpop.f32.mrb[4].mxu0  ;;  %v868_v50 = vpop.f32.mrb[4].mxu1 }
 0x19e   : > { %v828_v49 = vadd.f32 %v827_v47, %v370_v35  ;;  %v829_v51 = vpop.f32.mrb[5].mxu0  ;;  %v869_v52 = vadd.f32 %v868_v50, %v378_v36  ;;  %v870_v54 = vpop.f32.mrb[5].mxu1  ;;  %vm1575_vm0 = vcmp.lt.s32.totalorder %v1574_v33, 32 }
 0x19f   : > { %v830_v53 = vadd.f32 %v829_v51, %v374_v37  ;;  %v831_v55 = vpop.f32.mrb[6].mxu0  ;;  %1913 = vmatpush3.bf16.msra.mxu0 %v2084_v38  ;;  %v871_v58 = vadd.f32 %v870_v54, %v382_v44  ;;  %v872_v59 = vpop.f32.mrb[6].mxu1  ;;  %1935 = vmatpush3.bf16.msra.mxu1 %v2085_v45 }
 0x1a0   : > { %v879_v57 = vmax.f32 %v828_v49, 0.0  ;;  %v832_v0 = vpop.f32.mrb[7].mxu0  ;;  %1914 = vmatprep.subr.bf16.mxu0 %v2086_v46  ;;  %v881_v61 = vmax.f32 %v869_v52, 0.0  ;;  %v873_v63 = vpop.f32.mrb[7].mxu1  ;;  %1936 = vmatprep.subr.bf16.mxu1 %v2087_v48 }
 0x1a1   : > { %v880_v62 = vmax.f32 %v830_v53, 0.0  ;;  %v882_v1 = vmax.f32 %v871_v58, 0.0 }
 0x1a2   : > { %v889_v3 = vpack.c.bf16 %v881_v61, %v881_v61  ;;  %v887_v5 = vpack.c.bf16 %v879_v57, %v879_v57 }
 0x1a3   : > { %v888_v4 = vpack.c.bf16 %v880_v62, %v880_v62  ;;  %1915 = vmatpush3.bf16.msra.mxu0 %v2088_v56  ;;  %v890_v6 = vpack.c.bf16 %v882_v1, %v882_v1  ;;  %1937 = vmatpush3.bf16.msra.mxu1 %v2089_v60 }
 0x1a5   : > { %1520 = vmatprep.mubr.bf16.mxu0 %v888_v4  ;;  %1560 = vmatprep.mubr.bf16.mxu1 %v890_v6 }
 0x1a6   : > { %1521 = vmatmul.mubr.bf16.vlgmr.msra.gmra.mrb[12].mxu0 %v887_v5  ;;  %1561 = vmatmul.mubr.bf16.vlgmr.msra.gmra.mrb[12].mxu1 %v889_v3 }
 0x259   : > { %v1872_v8 = vpop.f32.mrb[8].mxu0  ;;  %v1894_v10 = vpop.f32.mrb[8].mxu1 }
 0x25a   : > { %v1873_v11 = vpop.f32.mrb[9].mxu0  ;;  %v1895_v14 = vpop.f32.mrb[9].mxu1 }
 0x25b   : > { %v1874_v13 = vadd.f32 %v1873_v11, %v1872_v8  ;;  %v1875_v15 = vpop.f32.mrb[10].mxu0  ;;  %v1896_v16 = vadd.f32 %v1895_v14, %v1894_v10  ;;  %v1897_v17 = vpop.f32.mrb[10].mxu1 }
 0x25c   : > { %v1876_v18 = vpop.f32.mrb[11].mxu0  ;;  %v1898_v20 = vpop.f32.mrb[11].mxu1 }
 0x25d   : > { %v1443_v19 = vadd.f32 %v1874_v13, %v1023_v9 }
 0x25f   : > { %v1483_v21 = vadd.f32 %v1896_v16, %v1443_v19 }
 0x279   : > { %v1916_v22 = vpop.f32.mrb[12].mxu0  ;;  %v1938_v12 = vpop.f32.mrb[12].mxu1 }
 0x27a   : > { %v1917_v23 = vpop.f32.mrb[13].mxu0  ;;  %v1939_v25 = vpop.f32.mrb[13].mxu1 }
 0x27b   : > { %v1918_v24 = vadd.f32 %v1917_v23, %v1916_v22  ;;  %v1919_v26 = vpop.f32.mrb[14].mxu0  ;;  %v1940_v27 = vadd.f32 %v1939_v25, %v1938_v12  ;;  %v1941_v28 = vpop.f32.mrb[14].mxu1 }
 0x27c   : > { %v1920_v41 = vpop.f32.mrb[15].mxu0  ;;  %v1942_v30 = vpop.f32.mrb[15].mxu1 }
 0x27d   : > { %v1523_v29 = vadd.f32 %v1918_v24, %v1483_v21 }
 0x27f   : > { %v1563_v31 = vadd.f32 %v1940_v27, %v1523_v29 }
 0x281   : > { %v1568_v32 = vadd.f32 %v1563_v31, %v2535_v2  ;;  %v1589_v2 = vrot.slane %v1019_v7, %v357_v43 }
 0x283   : > { %1569 = vadd.xlane.f32.xlu0 %v1568_v32 }
 0x310   : > { %v1570_v34 = vpop.xlane.xlu0 %1569 }
 0x311   : > { %v1571_v35 = vmul.f32 0.03125, %v1570_v34 }
 0x313   : > { %v1572_v36 = vsub.f32 %v1568_v32, %v1571_v35 }
 0x315   : > { %v1578_v37 = vsel %vm1575_vm0, %v1572_v36, 0.0 }
 0x316   : > { %v1579_v38 = vmul.f32 %v1578_v37, %v1578_v37 }
 0x318   : > { %1580 = vadd.xlane.f32.xlu0 %v1579_v38 }
 0x3a5   : > { %v1581_v44 = vpop.xlane.xlu0 %1580 }
 0x3a6   : > { %v1582_v45 = vmul.f32 0.03125, %v1581_v44 }
 0x3a8   : > { %v1583_v46 = vadd.f32 1e-05, %v1582_v45 }
 0x3aa   : > { %2090 = vrsqrt.f32 %v1583_v46 }
 0x3b4   : > { %v2091_v47 = vpop.eup %2090 }
 0x3b5   : > { %v1585_v48 = vmul.f32 %v2091_v47, %v1572_v36 }
 0x3b7   : > { %v1590_v49 = vmul.f32 %v1589_v2, %v1585_v48 }
 0x3b9   : > { %v1595_v50 = vadd.f32 %v1594_v39, %v1590_v49 }
 0x3bb   : > { %1596 = vst [vmem:[%s281_s13] sm:$0xff] %v1595_v50 }
 0x3bc   : > { %2219 = shalt.err (!%p2216_p4)
}
 0x3bd   : > { %s2220_s15 = scalar_lea.hbm %s2591_s8, 128  ;;  %s2224_s23 = scalar_lea.hbm %s2640_s5, 256 }
 0x3be   : > { %p2221_p0 = scmp.ne.s32.totalorder %s2591_s8, %s2220_s15  ;;  %p2225_p8 = scmp.lt.u32.totalorder %s2591_s8, %s2640_s5 }
 0x3bf   : > { %p2226_p13 = scmp.lt.u32.totalorder %s2224_s23, %s2220_s15  ;;  %p2228_p10 = scmp.lt.u32.totalorder %s2220_s15, %s2591_s8 }
 0x3c0   : > { %p2222_p9 = pnand %p2221_p0, %p2467_p5 }
 0x3c1   : > { %p2227_p6 = por %p2226_p13, %p2225_p8 }
 0x3c2   : > { %p2223_p11 = pneg %p2222_p9 }
 0x3c3   : > { %p2229_p3 = por %p2228_p10, %p2227_p6 }
 0x3c5   : > { %p2230_p7 = pnand %p2229_p3, %p2223_p11 }
 0x3c7   : > { %2233 = shalt.err (!%p2230_p7)
}
 0x3c8   : > { %1958 = dma.vmem_to_hbm [thread:$0]  (%p2467_p5), %s2593_s6, 128, %s2591_s8, %s1598_s29  }
 0x3c9 PF: > { %s1623_s11 = sand.u32 1, %s2268_s18   ;;  %p2658_p12 = scmp.ne.s32.totalorder %s2645_s25, 0 }
 0x3ca   : > { %p2659_p2 = scmp.ge.s32.totalorder %s2280_s21, 2  ;;  %s1624_s13 = scalar_lea.sflag [#allocation4], %s1623_s11 }
 0x3cc   : > { %p1975_p1 = pnand %p2659_p2, %p2658_p12 }
 0x3ce   : > { %2263 = dma.done.wait (!%p1975_p1), %s1624_s13, 128  }
 0x3cf   : > { %2265 = vsyncadd (!%p1975_p1), %s1624_s13, 4294967168  ;;  %p20_p4 = scmp.ge.s32.totalorder %s2453_s28, 4   ;;  %s2660_s18 = smov %s2272_s19 }
 0x3d0   : > { %s2661_s19 = smov %s2276_s20  ;;  %s2662_s20 = smov %s2463_s27 }
 0x3d1   : > { %s2663_s21 = smov %s2453_s28  ;;  %22 = sbr.rel (!%p20_p4) target bundleno = 7 (0x7), region = 97 }
 0x3d8   :  { %1629 = vsyncpa [#allocation3], 1 }
 0x3d9   :  { %1631 = vsyncpa [#allocation3 + $0x1], 1 }
 0x3da   :  { %1632 = vsyncpa [#allocation6], 1 }
 0x3db   :  { %1633 = vsyncpa [#allocation9], 1 }
 0x3dc   :  { %1634 = vsyncpa [#allocation4], 1 }
 0x3dd   :  { %1636 = vsyncpa [#allocation4 + $0x1], 1 }

</bundles_post_ra>
